<compile_context>
chip_gen: v6e
topology: v6e:2x2x1
jax: 0.10.0
libtpu: 0.0.40
codegen_flags: <defaults>
</compile_context>

<pallas_src>
import functools

import jax
import jax.numpy as jnp
from jax.experimental import pallas as pl
from jax.experimental.pallas import tpu as pltpu


def _round_up(x, m):
    return ((x + m - 1) // m) * m


def local_op_kernel(x_ref, w1_ref, b1_ref, w2_ref, b2_ref, o_ref, *, s):
    # x_ref : (d, s*GT) bf16   columns are s-major: m = j*GT + g  (lane-dense)
    # w1_ref: (C, d)    f32    conv1 weight with bn1 scale folded in
    # b1_ref: (C, 1)    f32    bn1 folded bias
    # w2_ref: (C, C)    bf16   conv2 weight with bn2 scale folded in
    # b2_ref: (C, 1)    f32    bn2 folded bias
    # o_ref : (C, GT)   f32    pooled output block (lane-dense)
    d = x_ref.shape[0]
    GT = o_ref.shape[1]

    # ---- layer 1 (K = d, tiny) in transposed orientation -> (C, s*GT) f32 --
    if d <= 16:
        # d broadcast multiply-adds on the VPU; each x row is a sublane
        # broadcast, each w1 column a lane broadcast -> everything lane-dense.
        w1 = w1_ref[...]
        y1 = w1[:, 0:1] * x_ref[0:1, :].astype(jnp.float32)
        for k in range(1, d):
            y1 = y1 + w1[:, k:k + 1] * x_ref[k:k + 1, :].astype(jnp.float32)
    else:
        y1 = jnp.dot(w1_ref[...].astype(jnp.bfloat16), x_ref[...],
                     preferred_element_type=jnp.float32)
    y1 = jnp.maximum(y1 + b1_ref[...], 0.0)

    # ---- layer 2 (K = C) on the MXU: bf16 inputs, f32 accumulation ----------
    y2 = jnp.dot(w2_ref[...], y1.astype(jnp.bfloat16),
                 preferred_element_type=jnp.float32)             # (C, s*GT)
    y2 = jnp.maximum(y2 + b2_ref[...], 0.0)

    # ---- max-pool over the s samples of every group --------------------------
    # Columns are s-major, so the pool is s-1 lane-dense elementwise maxima of
    # vreg-aligned (C, GT) slices (no XLU reduce, no final transpose).
    pooled = y2[:, 0:GT]
    for j in range(1, s):
        pooled = jnp.maximum(pooled, y2[:, j * GT:(j + 1) * GT])
    o_ref[...] = pooled.astype(o_ref.dtype)


def local_op_forward(x, params, *, groups_per_step=None):
    """x: (b, n, s, d) float32 -> (b, C, n) float32, matching PyTorch eval()."""
    b, n, s, d = x.shape
    w1 = params["w1"]          # (C, d)  conv1 weight (kernel dim squeezed)
    w2 = params["w2"]          # (C, C)  conv2 weight
    C = w1.shape[0]
    G = b * n

    eps = 1e-5
    # Fold eval-mode BatchNorm: scale into the weights, bias kept separate.
    s1 = params["bn1_gamma"] / jnp.sqrt(params["bn1_var"] + eps)
    b1 = params["bn1_beta"] - params["bn1_mean"] * s1
    s2 = params["bn2_gamma"] / jnp.sqrt(params["bn2_var"] + eps)
    b2 = params["bn2_beta"] - params["bn2_mean"] * s2
    w1f = (w1 * s1[:, None]).astype(jnp.float32)                 # (C, d)
    w2f = (w2 * s2[:, None]).astype(jnp.bfloat16)                # (C, C)
    b1r = b1.reshape(C, 1).astype(jnp.float32)
    b2r = b2.reshape(C, 1).astype(jnp.float32)

    # ---- groups per grid step: multiple of 128 (lane-dense output blocks),
    # >=2 steps when the problem allows (v7x has 2 TensorCores), capped by a
    # VMEM budget so a step fits on every generation (v7x: 64 MiB physical).
    if groups_per_step is not None:
        GT = _round_up(max(int(groups_per_step), 1), 128)
    else:
        GT = min(1024, _round_up(max(G // 2, 1), 128))
    vmem_budget = 28 * 1024 * 1024
    per_group = (2 * max(16, d) * s * 2       # x block (bf16), double-buffered
                 + 3 * C * s * 4              # y1 / y1(bf16) / y2 temporaries
                 + 2 * C * 4)                 # output block, double-buffered
    gt_cap = max(128, (vmem_budget // per_group) // 128 * 128)
    GT = max(128, min(GT, gt_cap))

    G_pad = _round_up(G, GT)
    num_steps = G_pad // GT

    # ---- single wrapper-side rearrangement of x -> (d, num_steps*s*GT) bf16:
    # channels on sublanes (no lane padding), positions lane-dense and s-major
    # within each block so the kernel DMA is contiguous and the pool is a set
    # of vreg-aligned slice maxima. Pad (if any) fuses into this same pass.
    xg = x.reshape(G, s, d)
    if G_pad != G:
        xg = jnp.pad(xg, ((0, G_pad - G), (0, 0), (0, 0)))
    xt = jnp.transpose(xg.reshape(num_steps, GT, s, d), (3, 0, 2, 1))
    xt = xt.reshape(d, num_steps * s * GT).astype(jnp.bfloat16)

    kernel = functools.partial(local_op_kernel, s=s)

    flops = 2 * G * s * C * (d + C)
    bytes_accessed = (2 * G_pad * s * d          # x (bf16)
                      + 4 * C * G_pad            # pooled output
                      + 4 * (C * d + 2 * C) + 2 * C * C)

    out = pl.pallas_call(
        kernel,
        out_shape=jax.ShapeDtypeStruct((C, G_pad), jnp.float32),
        grid_spec=pltpu.PrefetchScalarGridSpec(
            num_scalar_prefetch=0,
            grid=(num_steps,),
            in_specs=[
                pl.BlockSpec((d, s * GT), lambda t: (0, t)),
                pl.BlockSpec((C, d), lambda t: (0, 0)),
                pl.BlockSpec((C, 1), lambda t: (0, 0)),
                pl.BlockSpec((C, C), lambda t: (0, 0)),
                pl.BlockSpec((C, 1), lambda t: (0, 0)),
            ],
            out_specs=pl.BlockSpec((C, GT), lambda t: (0, t)),
        ),
        compiler_params=pltpu.CompilerParams(
            dimension_semantics=("parallel",),
            vmem_limit_bytes=48 * 1024 * 1024,
        ),
        cost_estimate=pl.CostEstimate(
            flops=flops, transcendentals=0, bytes_accessed=bytes_accessed),
    )(xt, w1f, b1r, w2f, b2r)

    # (C, G_pad) -> drop padded groups -> (C, b, n) -> (b, C, n)
    return jnp.transpose(out[:, :G].reshape(C, b, n), (1, 0, 2))


def local_op_reference(x, params):
    """Plain-JAX reference mirroring the PyTorch forward (eval-mode BN), f32."""
    b, n, s, d = x.shape
    eps = 1e-5
    xg = x.reshape(b * n, s, d)                                  # (G, s, d)
    y1 = jnp.einsum("gsd,cd->gsc", xg, params["w1"])
    s1 = params["bn1_gamma"] / jnp.sqrt(params["bn1_var"] + eps)
    y1 = jnp.maximum((y1 - params["bn1_mean"]) * s1 + params["bn1_beta"], 0.0)
    y2 = jnp.einsum("gsc,ec->gse", y1, params["w2"])
    s2 = params["bn2_gamma"] / jnp.sqrt(params["bn2_var"] + eps)
    y2 = jnp.maximum((y2 - params["bn2_mean"]) * s2 + params["bn2_beta"], 0.0)
    pooled = jnp.max(y2, axis=1)                                 # (G, C)
    C = params["w1"].shape[0]
    return jnp.transpose(pooled.reshape(b, n, C), (0, 2, 1))


def _make_params(key, d, C):
    k1, k2, k3, k4, k5, k6, k7, k8 = jax.random.split(key, 8)
    return {
        "w1": jax.random.normal(k1, (C, d), dtype=jnp.float32) * 0.1,
        "w2": jax.random.normal(k2, (C, C), dtype=jnp.float32) * 0.1,
        "bn1_gamma": 1.0 + 0.1 * jax.random.normal(k3, (C,), dtype=jnp.float32),
        "bn1_beta": 0.1 * jax.random.normal(k4, (C,), dtype=jnp.float32),
        "bn1_mean": 0.1 * jax.random.normal(k5, (C,), dtype=jnp.float32),
        "bn1_var": jnp.abs(jax.random.normal(k6, (C,), dtype=jnp.float32)) + 0.5,
        "bn2_gamma": 1.0 + 0.1 * jax.random.normal(k7, (C,), dtype=jnp.float32),
        "bn2_beta": 0.1 * jax.random.normal(k8, (C,), dtype=jnp.float32),
        "bn2_mean": jnp.zeros((C,), dtype=jnp.float32),
        "bn2_var": jnp.ones((C,), dtype=jnp.float32),
    }


if __name__ == "__main__":
    key = jax.random.PRNGKey(0)
    kx1, kx2, kp = jax.random.split(key, 3)

    # bf16 matmul inputs (f32 accumulation) -> compare at 1e-2.
    ATOL = RTOL = 1e-2

    # Case 1: tiny shapes (exercises group padding, single grid step).
    b, n, s, d = 2, 8, 16, 4
    C = 32
    params = _make_params(kp, d, C)
    x1 = jax.random.normal(kx1, (b, n, s, d), dtype=jnp.float32)

    out1 = jax.block_until_ready(local_op_forward(x1, params))
    ref1 = jax.block_until_ready(local_op_reference(x1, params))
    assert out1.shape == (b, C, n), out1.shape
    assert jnp.allclose(out1, ref1, atol=ATOL, rtol=RTOL), float(
        jnp.max(jnp.abs(out1 - ref1)))

    # Case 1b: user-supplied groups_per_step that is not a multiple of 128
    # (wrapper rounds it up -> still lowers and matches).
    out1b = jax.block_until_ready(
        local_op_forward(x1, params, groups_per_step=100))
    assert jnp.allclose(out1b, ref1, atol=ATOL, rtol=RTOL), float(
        jnp.max(jnp.abs(out1b - ref1)))

    # Case 2: larger group count (exercises multi-step grid, no padding).
    b2_, n2_ = 4, 64
    x2 = jax.random.normal(kx2, (b2_, n2_, s, d), dtype=jnp.float32)
    out2 = jax.block_until_ready(local_op_forward(x2, params))
    ref2 = jax.block_until_ready(local_op_reference(x2, params))
    assert out2.shape == (b2_, C, n2_), out2.shape
    assert jnp.allclose(out2, ref2, atol=ATOL, rtol=RTOL), float(
        jnp.max(jnp.abs(out2 - ref2)))

    print("KERNEL_OK")
</pallas_src>

<mosaic_0001>
module attributes {stable_mosaic.version = 11 : i64} {
  func.func @local_op_kernel(%arg0: i32, %arg1: memref<4x2048xbf16, #tpu.memory_space<vmem>>, %arg2: memref<32x4xf32, #tpu.memory_space<vmem>>, %arg3: memref<32x1xf32, #tpu.memory_space<vmem>>, %arg4: memref<32x32xbf16, #tpu.memory_space<vmem>>, %arg5: memref<32x1xf32, #tpu.memory_space<vmem>>, %arg6: memref<32x128xf32, #tpu.memory_space<vmem>>) attributes {dimension_semantics = [#tpu.dimension_semantics<parallel>], iteration_bounds = array<i64: 1>, scalar_prefetch = 0 : i64, scratch_operands = 0 : i64, tpu.core_type = #tpu.core_type<tc>, window_params = [{transform_indices = @transform_0, window_bounds = array<i64: 4, 2048>}, {pipeline_mode = #tpu.pipeline_mode<synchronous>, transform_indices = @transform_1, window_bounds = array<i64: 32, 4>}, {pipeline_mode = #tpu.pipeline_mode<synchronous>, transform_indices = @transform_2, window_bounds = array<i64: 32, 1>}, {pipeline_mode = #tpu.pipeline_mode<synchronous>, transform_indices = @transform_3, window_bounds = array<i64: 32, 32>}, {pipeline_mode = #tpu.pipeline_mode<synchronous>, transform_indices = @transform_4, window_bounds = array<i64: 32, 1>}, {transform_indices = @transform_5, window_bounds = array<i64: 32, 128>}]} {
    %c0 = arith.constant 0 : index
    %c0_0 = arith.constant 0 : index
    %0 = vector.load %arg2[%c0, %c0_0] : memref<32x4xf32, #tpu.memory_space<vmem>>, vector<32x4xf32>
    %1 = vector.extract_strided_slice %0 {offsets = [0, 0], sizes = [32, 1], strides = [1, 1]} : vector<32x4xf32> to vector<32x1xf32>
    %c0_1 = arith.constant 0 : index
    %c0_2 = arith.constant 0 : index
    %2 = vector.load %arg1[%c0_1, %c0_2] : memref<4x2048xbf16, #tpu.memory_space<vmem>>, vector<1x2048xbf16>
    %3 = arith.extf %2 : vector<1x2048xbf16> to vector<1x2048xf32>
    %4 = vector.broadcast %1 : vector<32x1xf32> to vector<32x2048xf32>
    %5 = vector.broadcast %3 : vector<1x2048xf32> to vector<32x2048xf32>
    %6 = arith.mulf %4, %5 : vector<32x2048xf32>
    %7 = vector.extract_strided_slice %0 {offsets = [0, 1], sizes = [32, 1], strides = [1, 1]} : vector<32x4xf32> to vector<32x1xf32>
    %c1 = arith.constant 1 : index
    %c0_3 = arith.constant 0 : index
    %8 = vector.load %arg1[%c1, %c0_3] : memref<4x2048xbf16, #tpu.memory_space<vmem>>, vector<1x2048xbf16>
    %9 = arith.extf %8 : vector<1x2048xbf16> to vector<1x2048xf32>
    %10 = vector.broadcast %7 : vector<32x1xf32> to vector<32x2048xf32>
    %11 = vector.broadcast %9 : vector<1x2048xf32> to vector<32x2048xf32>
    %12 = arith.mulf %10, %11 : vector<32x2048xf32>
    %13 = arith.addf %6, %12 : vector<32x2048xf32>
    %14 = vector.extract_strided_slice %0 {offsets = [0, 2], sizes = [32, 1], strides = [1, 1]} : vector<32x4xf32> to vector<32x1xf32>
    %c2 = arith.constant 2 : index
    %c0_4 = arith.constant 0 : index
    %15 = vector.load %arg1[%c2, %c0_4] : memref<4x2048xbf16, #tpu.memory_space<vmem>>, vector<1x2048xbf16>
    %16 = arith.extf %15 : vector<1x2048xbf16> to vector<1x2048xf32>
    %17 = vector.broadcast %14 : vector<32x1xf32> to vector<32x2048xf32>
    %18 = vector.broadcast %16 : vector<1x2048xf32> to vector<32x2048xf32>
    %19 = arith.mulf %17, %18 : vector<32x2048xf32>
    %20 = arith.addf %13, %19 : vector<32x2048xf32>
    %21 = vector.extract_strided_slice %0 {offsets = [0, 3], sizes = [32, 1], strides = [1, 1]} : vector<32x4xf32> to vector<32x1xf32>
    %c3 = arith.constant 3 : index
    %c0_5 = arith.constant 0 : index
    %22 = vector.load %arg1[%c3, %c0_5] : memref<4x2048xbf16, #tpu.memory_space<vmem>>, vector<1x2048xbf16>
    %23 = arith.extf %22 : vector<1x2048xbf16> to vector<1x2048xf32>
    %24 = vector.broadcast %21 : vector<32x1xf32> to vector<32x2048xf32>
    %25 = vector.broadcast %23 : vector<1x2048xf32> to vector<32x2048xf32>
    %26 = arith.mulf %24, %25 : vector<32x2048xf32>
    %27 = arith.addf %20, %26 : vector<32x2048xf32>
    %c0_6 = arith.constant 0 : index
    %c0_7 = arith.constant 0 : index
    %28 = vector.load %arg3[%c0_6, %c0_7] : memref<32x1xf32, #tpu.memory_space<vmem>>, vector<32x1xf32>
    %29 = vector.broadcast %28 : vector<32x1xf32> to vector<32x2048xf32>
    %30 = arith.addf %27, %29 : vector<32x2048xf32>
    %cst = arith.constant 0.000000e+00 : f32
    %31 = vector.broadcast %cst : f32 to vector<32x2048xf32>
    %32 = arith.maximumf %30, %31 : vector<32x2048xf32>
    %c0_8 = arith.constant 0 : index
    %c0_9 = arith.constant 0 : index
    %33 = vector.load %arg4[%c0_8, %c0_9] : memref<32x32xbf16, #tpu.memory_space<vmem>>, vector<32x32xbf16>
    %34 = arith.truncf %32 : vector<32x2048xf32> to vector<32x2048xbf16>
    %cst_10 = arith.constant dense<0.000000e+00> : vector<32x2048xf32>
    %35 = tpu.matmul %33, %34, %cst_10 {dimension_numbers = #tpu.dot_dimension_numbers<[1], [0], [0], [1], [0, 0, 1, 1], [], []>} : vector<32x32xbf16>, vector<32x2048xbf16>, vector<32x2048xf32> -> vector<32x2048xf32>
    %c0_11 = arith.constant 0 : index
    %c0_12 = arith.constant 0 : index
    %36 = vector.load %arg5[%c0_11, %c0_12] : memref<32x1xf32, #tpu.memory_space<vmem>>, vector<32x1xf32>
    %37 = vector.broadcast %36 : vector<32x1xf32> to vector<32x2048xf32>
    %38 = arith.addf %35, %37 : vector<32x2048xf32>
    %cst_13 = arith.constant 0.000000e+00 : f32
    %39 = vector.broadcast %cst_13 : f32 to vector<32x2048xf32>
    %40 = arith.maximumf %38, %39 : vector<32x2048xf32>
    %41 = vector.extract_strided_slice %40 {offsets = [0, 0], sizes = [32, 128], strides = [1, 1]} : vector<32x2048xf32> to vector<32x128xf32>
    %42 = vector.extract_strided_slice %40 {offsets = [0, 128], sizes = [32, 128], strides = [1, 1]} : vector<32x2048xf32> to vector<32x128xf32>
    %43 = arith.maximumf %41, %42 : vector<32x128xf32>
    %44 = vector.extract_strided_slice %40 {offsets = [0, 256], sizes = [32, 128], strides = [1, 1]} : vector<32x2048xf32> to vector<32x128xf32>
    %45 = arith.maximumf %43, %44 : vector<32x128xf32>
    %46 = vector.extract_strided_slice %40 {offsets = [0, 384], sizes = [32, 128], strides = [1, 1]} : vector<32x2048xf32> to vector<32x128xf32>
    %47 = arith.maximumf %45, %46 : vector<32x128xf32>
    %48 = vector.extract_strided_slice %40 {offsets = [0, 512], sizes = [32, 128], strides = [1, 1]} : vector<32x2048xf32> to vector<32x128xf32>
    %49 = arith.maximumf %47, %48 : vector<32x128xf32>
    %50 = vector.extract_strided_slice %40 {offsets = [0, 640], sizes = [32, 128], strides = [1, 1]} : vector<32x2048xf32> to vector<32x128xf32>
    %51 = arith.maximumf %49, %50 : vector<32x128xf32>
    %52 = vector.extract_strided_slice %40 {offsets = [0, 768], sizes = [32, 128], strides = [1, 1]} : vector<32x2048xf32> to vector<32x128xf32>
    %53 = arith.maximumf %51, %52 : vector<32x128xf32>
    %54 = vector.extract_strided_slice %40 {offsets = [0, 896], sizes = [32, 128], strides = [1, 1]} : vector<32x2048xf32> to vector<32x128xf32>
    %55 = arith.maximumf %53, %54 : vector<32x128xf32>
    %56 = vector.extract_strided_slice %40 {offsets = [0, 1024], sizes = [32, 128], strides = [1, 1]} : vector<32x2048xf32> to vector<32x128xf32>
    %57 = arith.maximumf %55, %56 : vector<32x128xf32>
    %58 = vector.extract_strided_slice %40 {offsets = [0, 1152], sizes = [32, 128], strides = [1, 1]} : vector<32x2048xf32> to vector<32x128xf32>
    %59 = arith.maximumf %57, %58 : vector<32x128xf32>
    %60 = vector.extract_strided_slice %40 {offsets = [0, 1280], sizes = [32, 128], strides = [1, 1]} : vector<32x2048xf32> to vector<32x128xf32>
    %61 = arith.maximumf %59, %60 : vector<32x128xf32>
    %62 = vector.extract_strided_slice %40 {offsets = [0, 1408], sizes = [32, 128], strides = [1, 1]} : vector<32x2048xf32> to vector<32x128xf32>
    %63 = arith.maximumf %61, %62 : vector<32x128xf32>
    %64 = vector.extract_strided_slice %40 {offsets = [0, 1536], sizes = [32, 128], strides = [1, 1]} : vector<32x2048xf32> to vector<32x128xf32>
    %65 = arith.maximumf %63, %64 : vector<32x128xf32>
    %66 = vector.extract_strided_slice %40 {offsets = [0, 1664], sizes = [32, 128], strides = [1, 1]} : vector<32x2048xf32> to vector<32x128xf32>
    %67 = arith.maximumf %65, %66 : vector<32x128xf32>
    %68 = vector.extract_strided_slice %40 {offsets = [0, 1792], sizes = [32, 128], strides = [1, 1]} : vector<32x2048xf32> to vector<32x128xf32>
    %69 = arith.maximumf %67, %68 : vector<32x128xf32>
    %70 = vector.extract_strided_slice %40 {offsets = [0, 1920], sizes = [32, 128], strides = [1, 1]} : vector<32x2048xf32> to vector<32x128xf32>
    %71 = arith.maximumf %69, %70 : vector<32x128xf32>
    %c0_14 = arith.constant 0 : index
    %c0_15 = arith.constant 0 : index
    %72 = vector.load %arg6[%c0_14, %c0_15] : memref<32x128xf32, #tpu.memory_space<vmem>>, vector<32x128xf32>
    tpu.vector_store %arg6[%c0_14, %c0_15], %71 {strides = array<i32>} : memref<32x128xf32, #tpu.memory_space<vmem>>, vector<32x128xf32>,
    return
  }
  func.func @transform_0(%arg0: i32) -> (i32, i32) {
    %c0_i32 = arith.constant 0 : i32
    %c0_i32_0 = arith.constant 0 : i32
    return %c0_i32, %arg0 : i32, i32
  }
  func.func @transform_1(%arg0: i32) -> (i32, i32) {
    %c0_i32 = arith.constant 0 : i32
    %c0_i32_0 = arith.constant 0 : i32
    %c0_i32_1 = arith.constant 0 : i32
    return %c0_i32, %c0_i32_0 : i32, i32
  }
  func.func @transform_2(%arg0: i32) -> (i32, i32) {
    %c0_i32 = arith.constant 0 : i32
    %c0_i32_0 = arith.constant 0 : i32
    %c0_i32_1 = arith.constant 0 : i32
    return %c0_i32, %c0_i32_0 : i32, i32
  }
  func.func @transform_3(%arg0: i32) -> (i32, i32) {
    %c0_i32 = arith.constant 0 : i32
    %c0_i32_0 = arith.constant 0 : i32
    %c0_i32_1 = arith.constant 0 : i32
    return %c0_i32, %c0_i32_0 : i32, i32
  }
  func.func @transform_4(%arg0: i32) -> (i32, i32) {
    %c0_i32 = arith.constant 0 : i32
    %c0_i32_0 = arith.constant 0 : i32
    %c0_i32_1 = arith.constant 0 : i32
    return %c0_i32, %c0_i32_0 : i32, i32
  }
  func.func @transform_5(%arg0: i32) -> (i32, i32) {
    %c0_i32 = arith.constant 0 : i32
    %c0_i32_0 = arith.constant 0 : i32
    return %c0_i32, %arg0 : i32, i32
  }
}

</mosaic_0001>

<bundles_post_ra>
// kernel: tpu_custom_call.1
= control target key start
LH: loop header
LB: loop body
LE: loop exit
PB: predicated region body
PF: predicated region fallthrough
CT: control target
= control target key end

     0   :  { %v2015_v1 = vmov 3   ;;  %v2016_v2 = vmov 1   ;;  %v3440_v4 = vmov 0   ;;  %v2018_v5 = vmov 2   ;;  %s3434_s0 = inlined_call_operand.vmem [shape: bf16[4,2048], index: 0, kind: input, shape index: {}]   ;;  %s3435_s1 = inlined_call_operand.vmem [shape: f32[32,4], index: 1, kind: input, shape index: {}]   ;;  %s3436_s2 = inlined_call_operand.vmem [shape: f32[32,1], index: 2, kind: input, shape index: {}]   ;;  %s3437_s3 = inlined_call_operand.vmem [shape: bf16[32,32], index: 3, kind: input, shape index: {}]   ;;  %s3438_s4 = inlined_call_operand.vmem [shape: f32[32,1], index: 4, kind: input, shape index: {}]   ;;  %s3439_s5 = inlined_call_operand.hbm [shape: f32[32,128], index: 5, kind: output, shape index: {}]  }
   0x1   :  { %v24_v0 = vld [vmem:[%s3435_s1 + $0x10] sm:$0xff]  ;;  %1984 = vset.pattern.permute.xlu0 %v2015_v1  ;;  %1980 = vset.pattern.permute.xlu1 %v2016_v2  ;;  %v25_v3 = vld [vmem:[%s3435_s1 + $0x18] sm:$0xff] }
   0x2   :  { %879 = vperm.xlu0 %1984, %v24_v0   ;;  %283 = vperm.xlu1 %1980, %v24_v0  }
   0x3   :  { %1419 = vmatprep.mubr.bf16.mxu0 %v3440_v4  ;;  %1472 = vmatprep.mubr.bf16.mxu1 %v3440_v4 }
   0x6   :  { %1985 = vset.pattern.permute.xlu0 %v2018_v5  ;;  %287 = vperm.xlu1 %1980, %v25_v3  }
   0x7   :  { %583 = vperm.xlu0 %1985, %v24_v0  }
   0x8   :  { %10 = vsyncpa [#allocation3], 0  ;;  %v23_v6 = vld [vmem:[%s3435_s1 + $0x8] sm:$0xff]  ;;  %v22_v7 = vld [vmem:[%s3435_s1] sm:$0xff]  ;;  %v66_v16 = vlaneseq  ;;  %vm1380_vm0 = vcmask 261120  }
   0x9   :  { %v1160_v8 = vld [vmem:[%s3436_s2 + $0x10] sm:$0xff]  ;;  %v1159_v9 = vld [vmem:[%s3436_s2 + $0x8] sm:$0xff]  ;;  %v1349_v11 = vld [vmem:[%s3438_s4 + $0x18] sm:$0xff] }
   0xa   :  { %1981 = vset.pattern.permute.xlu1 %v2018_v5  ;;  %v1347_v10 = vld [vmem:[%s3438_s4 + $0x8] sm:$0xff]  ;;  %v1161_v12 = vld [vmem:[%s3436_s2 + $0x18] sm:$0xff]  ;;  %v1158_v13 = vld [vmem:[%s3436_s2] sm:$0xff]  ;;  %v67_v17 = vshrl.u32 %v66_v16, 7 }
   0xb   :  { %587 = vperm.xlu1 %1981, %v25_v3   ;;  %579 = vperm.xlu0 %1985, %v23_v6   ;;  %v1346_v14 = vld [vmem:[%s3438_s4] sm:$0xff]  ;;  %v1348_v15 = vld [vmem:[%s3438_s4 + $0x10] sm:$0xff]  ;;  %v27_v35 = vld [vmem:[%s3434_s0 + $0x8] sm:$0x55] }
   0xc   :  { %v26_v18 = vld [vmem:[%s3434_s0] sm:$0x55]  ;;  %v562_v19 = vld [vmem:[%s3434_s0] sm:$0xaa]  ;;  %v2099_v21 = vsub.s32 5, %v67_v17  ;;  %v2101_v22 = vsub.s32 1, %v67_v17  ;;  %v32_v46 = vunpack.c.l.bf16 %v27_v35  ;;  %v33_v50 = vunpack.c.h.bf16 %v27_v35 }
   0xd   :  { %v30_v20 = vunpack.c.l.bf16 %v26_v18  ;;  %v566_v23 = vunpack.c.l.bf16 %v562_v19  ;;  %v2103_v24 = vsub.s32 6, %v67_v17  ;;  %v2105_v25 = vsub.s32 4, %v67_v17  ;;  %v563_v38 = vld [vmem:[%s3434_s0 + $0x8] sm:$0xaa] }
   0xe   :  { %v31_v26 = vunpack.c.h.bf16 %v26_v18  ;;  %v2108_v28 = vsub.s32 2, %v67_v17  ;;  %v567_v29 = vunpack.c.h.bf16 %v562_v19  ;;  %v2110_v30 = vsub.s32 0, %v67_v17 }
   0xf   :  { %1982 = vset.pattern.permute.xlu1 %v3440_v4  ;;  %1988 = vset.pattern.permute.xlu0 %v3440_v4  ;;  %v297_v27 = vrot.slane %v30_v20, %v2099_v21  ;;  %v605_v31 = vrot.slane %v566_v23, %v2103_v24  ;;  %v293_v32 = vrot.slane %v30_v20, %v2101_v22  ;;  %v2119_v36 = vsub.s32 7, %v67_v17 }
  0x10   :  { %50 = vperm.xlu0 %1988, %v24_v0   ;;  %40 = vperm.xlu1 %1982, %v22_v7   ;;  %3524 = vst [vmem:[#allocation5_spill] sm:$0xff] %v2108_v28  ;;  %3525 = vst [vmem:[#allocation6_spill] sm:$0xff] %v2110_v30  ;;  %v73_v33 = vrot.slane %v30_v20, %v2105_v25  ;;  %v81_v34 = vrot.slane %v31_v26, %v2105_v25  ;;  %v2128_v40 = vsub.s32 3, %v67_v17  ;;  %v564_v17 = vld [vmem:[%s3434_s0 + $0x10] sm:$0xaa] }
  0x11   :  { %3526 = vst [vmem:[#allocation7_spill] sm:$0xff] %v2119_v36  ;;  %v305_v37 = vrot.slane %v31_v26, %v2099_v21  ;;  %v2126_v39 = vrot.slane %v297_v27, %v2101_v22  ;;  %v613_v41 = vrot.slane %v567_v29, %v2103_v24  ;;  %v601_v42 = vrot.slane %v566_v23, %v2108_v28 }
  0x12   :  { %3527 = vst [vmem:[#allocation8_spill] sm:$0xff] %v2128_v40  ;;  %v2133_v43 = vrot.slane %v605_v31, %v2108_v28  ;;  %v69_v44 = vrot.slane %v30_v20, %v2110_v30  ;;  %v2137_v45 = vrot.slane %v293_v32, %v2101_v22  ;;  %v2140_v47 = vrot.slane %v73_v33, %v2110_v30 }
  0x13   :  { %v2143_v48 = vrot.slane %v81_v34, %v2110_v30  ;;  %v2145_v49 = vunpack.c.l.bf16 %v563_v38  ;;  %v893_v51 = vrot.slane %v566_v23, %v2119_v36  ;;  %v2149_v52 = vrot.slane %v305_v37, %v2101_v22 }
  0x14   :  { %55 = vperm.xlu0 %1988, %v25_v3   ;;  %1983 = vset.pattern.permute.xlu1 %v2016_v2  ;;  %v901_v53 = vrot.slane %v567_v29, %v2119_v36  ;;  %v77_v54 = vrot.slane %v31_v26, %v2110_v30  ;;  %v2154_v55 = vrot.slane %v613_v41, %v2108_v28  ;;  %v569_v62 = vunpack.c.h.bf16 %v563_v38 }
  0x15   :  { %275 = vperm.xlu1 %1983, %v22_v7   ;;  %v889_v56 = vrot.slane %v566_v23, %v2128_v40  ;;  %v301_v57 = vrot.slane %v31_v26, %v2101_v22  ;;  %v609_v58 = vrot.slane %v567_v29, %v2108_v28  ;;  %v2160_v59 = vrot.slane %v69_v44, %v2110_v30 }
  0x16   :  { %v897_v60 = vrot.slane %v567_v29, %v2128_v40  ;;  %v313_v61 = vrot.slane %v32_v46, %v2099_v21  ;;  %v2165_v63 = vrot.slane %v601_v42, %v2108_v28  ;;  %v621_v0 = vrot.slane %v2145_v49, %v2103_v24 }
  0x17   :  { %v309_v2 = vrot.slane %v32_v46, %v2101_v22  ;;  %v629_v16 = vrot.slane %v569_v62, %v2103_v24  ;;  %v909_v19 = vrot.slane %v2145_v49, %v2119_v36  ;;  %v617_v27 = vrot.slane %v2145_v49, %v2108_v28 }
  0x18   :  { %45 = vperm.xlu0 %1988, %v23_v6   ;;  %v2206_v18 = vrot.slane %v621_v0, %v2108_v28  ;;  %v85_v32 = vrot.slane %v32_v46, %v2110_v30  ;;  %v570_v34 = vunpack.c.l.bf16 %v564_v17  ;;  %v2227_v35 = vunpack.c.h.bf16 %v564_v17  ;;  %v565_v17 = vld [vmem:[%s3434_s0 + $0x18] sm:$0xaa] }
  0x19   :  { %279 = vperm.xlu1 %1983, %v23_v6   ;;  %v2214_v23 = vrot.slane %v309_v2, %v2101_v22  ;;  %v2233_v38 = vrot.slane %v629_v16, %v2108_v28  ;;  %v917_v41 = vrot.slane %v569_v62, %v2119_v36  ;;  %v93_v42 = vrot.slane %v33_v50, %v2110_v30 }
  0x1a   :  { %3530 = vst [vmem:[#allocation11_spill] sm:$0xff] %v2206_v18  ;;  %v2238_v44 = vrot.slane %v909_v19, %v2128_v40  ;;  %v925_v2 = vrot.slane %v570_v34, %v2119_v36 }
  0x1b   :  { %3532 = vst [vmem:[#allocation13_spill] sm:$0xff] %v2214_v23  ;;  %3536 = vst [vmem:[#allocation17_spill] sm:$0xff] %v2233_v38  ;;  %v2262_v0 = vrot.slane %v917_v41, %v2128_v40 }
  0x1c   :  { %1174 = vperm.xlu0 %1988, %v1160_v8   ;;  %v2182_v8 = vrot.slane %v889_v56, %v2128_v40 }
  0x1d   :  { %1986 = vset.pattern.permute.xlu1 %v2015_v1  ;;  %3539 = vst [vmem:[#allocation20_spill] sm:$0xff] %v2262_v0 }
  0x1e   :  { %883 = vperm.xlu1 %1986, %v25_v3   ;;  %v2172_v3 = vrot.slane %v893_v51, %v2128_v40  ;;  %v625_v51 = vrot.slane %v569_v62, %v2108_v28 }
  0x20   :  { %1169 = vperm.xlu0 %1988, %v1159_v9   ;;  %v2185_v9 = vrot.slane %v301_v57, %v2101_v22 }
  0x22   :  { %1987 = vset.pattern.permute.xlu1 %v2018_v5  ;;  %v2175_v5 = vrot.slane %v901_v53, %v2128_v40  ;;  %v913_v53 = vrot.slane %v569_v62, %v2128_v40  ;;  %v29_v62 = vld [vmem:[%s3434_s0 + $0x18] sm:$0x55] }
  0x23   :  { %575 = vperm.xlu1 %1987, %v22_v7   ;;  %v2292_v41 = vunpack.c.l.bf16 %v29_v62 }
  0x24   :  { %1357 = vperm.xlu0 %1988, %v1347_v10   ;;  %v2188_v10 = vrot.slane %v609_v58, %v2108_v28  ;;  %v2252_v58 = vrot.slane %v85_v32, %v2110_v30 }
  0x25   :  { %3547 = vst [vmem:[#allocation28_spill] sm:$0xff] %v2292_v41 }
  0x26   :  { %3538 = vst [vmem:[#allocation19_spill] sm:$0xff] %v2252_v58 }
  0x27   :  { %1989 = vset.pattern.permute.xlu1 %v2015_v1  ;;  %v321_v1 = vrot.slane %v33_v50, %v2099_v21 }
  0x28   :  { %1367 = vperm.xlu0 %1988, %v1349_v11   ;;  %871 = vperm.xlu1 %1989, %v22_v7   ;;  %v89_v7 = vrot.slane %v32_v46, %v2105_v25  ;;  %v317_v11 = vrot.slane %v33_v50, %v2101_v22  ;;  %v905_v46 = vrot.slane %v2145_v49, %v2128_v40 }
  0x29   :  { %v2211_v20 = vrot.slane %v321_v1, %v2101_v22  ;;  %v645_v49 = vrot.slane %v2227_v35, %v2103_v24  ;;  %v2265_v1 = vrot.slane %v93_v42, %v2110_v30 }
  0x2a   :  { %v2217_v26 = vrot.slane %v89_v7, %v2110_v30  ;;  %v2225_v33 = vrot.slane %v317_v11, %v2101_v22  ;;  %v2271_v11 = vrot.slane %v905_v46, %v2128_v40 }
  0x2b   :  { %3531 = vst [vmem:[#allocation12_spill] sm:$0xff] %v2211_v20  ;;  %3540 = vst [vmem:[#allocation21_spill] sm:$0xff] %v2265_v1 }
  0x2c   :  { %875 = vperm.xlu1 %1989, %v23_v6   ;;  %v2178_v6 = vrot.slane %v77_v54, %v2110_v30  ;;  %3533 = vst [vmem:[#allocation14_spill] sm:$0xff] %v2217_v26  ;;  %3534 = vst [vmem:[#allocation15_spill] sm:$0xff] %v2225_v33  ;;  %v2245_v54 = vrot.slane %v617_v27, %v2108_v28 }
  0x2d   :  { %3541 = vst [vmem:[#allocation22_spill] sm:$0xff] %v2271_v11 }
  0x2e   :  { %3528 = vst [vmem:[#allocation9_spill] sm:$0xff] %v2178_v6  ;;  %3537 = vst [vmem:[#allocation18_spill] sm:$0xff] %v2245_v54 }
  0x30   :  { %1990 = vset.pattern.permute.xlu1 %v3440_v4  ;;  %v345_v4 = vrot.slane %v2292_v41, %v2099_v21 }
  0x31   :  { %1179 = vperm.xlu1 %1990, %v1161_v12   ;;  %v28_v12 = vld [vmem:[%s3434_s0 + $0x10] sm:$0x55] }
  0x32   :  { %v34_v29 = vunpack.c.l.bf16 %v28_v12  ;;  %v2221_v31 = vunpack.c.h.bf16 %v28_v12  ;;  %v2274_v12 = vrot.slane %v625_v51, %v2108_v28  ;;  %v2303_v51 = vunpack.c.h.bf16 %v29_v62 }
  0x33   :  { %v921_v62 = vrot.slane %v570_v34, %v2128_v40 }
  0x34   :  { %v105_v56 = vrot.slane %v34_v29, %v2105_v25  ;;  %v329_v57 = vrot.slane %v34_v29, %v2099_v21  ;;  %v113_v7 = vrot.slane %v2221_v31, %v2105_v25  ;;  %3542 = vst [vmem:[#allocation23_spill] sm:$0xff] %v2274_v12  ;;  %v101_v16 = vrot.slane %v34_v29, %v2110_v30 }
  0x35   :  { %1164 = vperm.xlu1 %1990, %v1158_v13   ;;  %v2195_v13 = vrot.slane %v897_v60, %v2128_v40  ;;  %v637_v60 = vrot.slane %v570_v34, %v2103_v24  ;;  %3551 = vst [vmem:[#allocation32_spill] sm:$0xff] %v2303_v51  ;;  %v2358_v26 = vrot.slane %v921_v62, %v2128_v40 }
  0x36   :  { %v2284_v19 = vrot.slane %v105_v56, %v2110_v30  ;;  %v2287_v27 = vrot.slane %v329_v57, %v2101_v22  ;;  %v2309_v56 = vrot.slane %v113_v7, %v2110_v30  ;;  %v333_v57 = vrot.slane %v2221_v31, %v2101_v22 }
  0x37   :  { %v2295_v42 = vrot.slane %v637_v60, %v2108_v28  ;;  %v933_v60 = vrot.slane %v2227_v35, %v2119_v36  ;;  %v641_v7 = vrot.slane %v2227_v35, %v2108_v28  ;;  %3560 = vst [vmem:[#allocation41_spill] sm:$0xff] %v2358_v26 }
  0x38   :  { %3544 = vst [vmem:[#allocation25_spill] sm:$0xff] %v2284_v19  ;;  %3545 = vst [vmem:[#allocation26_spill] sm:$0xff] %v2287_v27  ;;  %v2353_v58 = vrot.slane %v333_v57, %v2101_v22 }
  0x39   :  { %1352 = vperm.xlu1 %1990, %v1346_v14   ;;  %v2198_v14 = vrot.slane %v313_v61, %v2101_v22  ;;  %v325_v61 = vrot.slane %v34_v29, %v2101_v22  ;;  %3548 = vst [vmem:[#allocation29_spill] sm:$0xff] %v2295_v42  ;;  %v2298_v29 = vrot.slane %v645_v49, %v2108_v28  ;;  %3553 = vst [vmem:[#allocation34_spill] sm:$0xff] %v2309_v56 }
  0x3a   :  { %v2318_v49 = vrot.slane %v101_v16, %v2110_v30  ;;  %v929_v56 = vrot.slane %v2227_v35, %v2128_v40  ;;  %v121_v16 = vrot.slane %v2292_v41, %v2105_v25  ;;  %v349_v35 = vrot.slane %v2303_v51, %v2101_v22  ;;  %3559 = vst [vmem:[#allocation40_spill] sm:$0xff] %v2353_v58 }
  0x3b   :  { %3529 = vst [vmem:[#allocation10_spill] sm:$0xff] %v2198_v14  ;;  %3549 = vst [vmem:[#allocation30_spill] sm:$0xff] %v2298_v29  ;;  %v2301_v46 = vrot.slane %v325_v61, %v2101_v22  ;;  %v633_v61 = vrot.slane %v570_v34, %v2108_v28  ;;  %v353_v34 = vrot.slane %v2303_v51, %v2099_v21 }
  0x3c   :  { %3555 = vst [vmem:[#allocation36_spill] sm:$0xff] %v2318_v49  ;;  %v2347_v1 = vrot.slane %v933_v60, %v2128_v40  ;;  %v2364_v6 = vrot.slane %v641_v7, %v2108_v28  ;;  %v2367_v60 = vrot.slane %v345_v4, %v2101_v22  ;;  %v2373_v57 = vrot.slane %v121_v16, %v2110_v30 }
  0x3d   :  { %1362 = vperm.xlu1 %1990, %v1348_v15   ;;  %v97_v15 = vrot.slane %v33_v50, %v2105_v25  ;;  %v337_v50 = vrot.slane %v2221_v31, %v2099_v21  ;;  %3550 = vst [vmem:[#allocation31_spill] sm:$0xff] %v2301_v46  ;;  %v2328_v46 = vunpack.c.h.bf16 %v565_v17  ;;  %v2350_v21 = vrot.slane %v633_v61, %v2108_v28 }
  0x3e   :  { %3557 = vst [vmem:[#allocation38_spill] sm:$0xff] %v2347_v1  ;;  %3562 = vst [vmem:[#allocation43_spill] sm:$0xff] %v2364_v6  ;;  %v2370_v61 = vrot.slane %v929_v56, %v2128_v40  ;;  %v2391_v56 = vrot.slane %v349_v35, %v2101_v22 }
  0x3f   :  { %v2230_v37 = vrot.slane %v97_v15, %v2110_v30  ;;  %v2277_v15 = vrot.slane %v913_v53, %v2128_v40  ;;  %v2290_v32 = vrot.slane %v337_v50, %v2101_v22  ;;  %v2306_v53 = vrot.slane %v925_v2, %v2128_v40  ;;  %3556 = vst [vmem:[#allocation37_spill] sm:$0xff] %v2328_v46 }
  0x40   :  { %v2313_v50 = vunpack.c.l.bf16 %v565_v17  ;;  %v109_v2 = vrot.slane %v2221_v31, %v2110_v30  ;;  %v341_v31 = vrot.slane %v2292_v41, %v2101_v22  ;;  %v661_v17 = vrot.slane %v2328_v46, %v2103_v24  ;;  %3558 = vst [vmem:[#allocation39_spill] sm:$0xff] %v2350_v21  ;;  %3563 = vst [vmem:[#allocation44_spill] sm:$0xff] %v2367_v60 }
  0x41   :  { %3535 = vst [vmem:[#allocation16_spill] sm:$0xff] %v2230_v37  ;;  %3543 = vst [vmem:[#allocation24_spill] sm:$0xff] %v2277_v15  ;;  %v129_v37 = vrot.slane %v2303_v51, %v2105_v25  ;;  %v2376_v25 = vrot.slane %v353_v34, %v2101_v22 }
  0x42   :  { %3546 = vst [vmem:[#allocation27_spill] sm:$0xff] %v2290_v32  ;;  %3552 = vst [vmem:[#allocation33_spill] sm:$0xff] %v2306_v53  ;;  %v653_v49 = vrot.slane %v2313_v50, %v2103_v24  ;;  %v941_v19 = vrot.slane %v2313_v50, %v2119_v36  ;;  %v2361_v24 = vrot.slane %v109_v2, %v2110_v30 }
  0x43   :  { %3554 = vst [vmem:[#allocation35_spill] sm:$0xff] %v2313_v50  ;;  %3564 = vst [vmem:[#allocation45_spill] sm:$0xff] %v2370_v61  ;;  %v2379_v62 = vrot.slane %v341_v31, %v2101_v22  ;;  %v2388_v4 = vrot.slane %v661_v17, %v2108_v28  ;;  %v2398_v34 = vrot.slane %v129_v37, %v2110_v30 }
  0x44   :  { %3561 = vst [vmem:[#allocation42_spill] sm:$0xff] %v2361_v24  ;;  %3565 = vst [vmem:[#allocation46_spill] sm:$0xff] %v2373_v57  ;;  %v2382_v2 = vrot.slane %v653_v49, %v2108_v28  ;;  %v2385_v7 = vrot.slane %v941_v19, %v2128_v40 }
  0x45   :  { %3566 = vst [vmem:[#allocation47_spill] sm:$0xff] %v2376_v25  ;;  %3567 = vst [vmem:[#allocation48_spill] sm:$0xff] %v2379_v62 }
  0x46   :  { %3568 = vst [vmem:[#allocation49_spill] sm:$0xff] %v2382_v2  ;;  %3569 = vst [vmem:[#allocation50_spill] sm:$0xff] %v2385_v7 }
  0x47   :  { %3570 = vst [vmem:[#allocation51_spill] sm:$0xff] %v2388_v4  ;;  %3571 = vst [vmem:[#allocation52_spill] sm:$0xff] %v2391_v56 }
  0x48   :  { %3574 = vst [vmem:[#allocation55_spill] sm:$0xff] %v2398_v34 }
  0x7d   :  { %v2393_v16 = vpop.permute.xlu1 %283  ;;  %v2395_v51 = vpop.permute.xlu0 %879 }
  0x7e   :  { %3572 = vst [vmem:[#allocation53_spill] sm:$0xff] %v2393_v16  ;;  %3573 = vst [vmem:[#allocation54_spill] sm:$0xff] %v2395_v51  ;;  %v2408_v22 = vmul.f32 %v2126_v39, %v2393_v16  ;;  %v2412_v17 = vmul.f32 %v2172_v3, %v2395_v51  ;;  %v2416_v37 = vmul.f32 %v2149_v52, %v2393_v16 }
  0x7f   :  { %v2420_v35 = vmul.f32 %v2175_v5, %v2395_v51  ;;  %v2424_v19 = vmul.f32 %v2137_v45, %v2393_v16  ;;  %v2428_v31 = vmul.f32 %v2182_v8, %v2395_v51  ;;  %v2432_v49 = vmul.f32 %v2185_v9, %v2393_v16 }
  0x80   :  { %v2436_v56 = vmul.f32 %v2195_v13, %v2395_v51  ;;  %v2440_v50 = vmul.f32 %v2198_v14, %v2393_v16  ;;  %v2444_v28 = vmul.f32 %v2238_v44, %v2395_v51  ;;  %v2448_v62 = vmul.f32 %v2211_v20, %v2393_v16 }
  0x81   :  { %v2452_v41 = vmul.f32 %v2262_v0, %v2395_v51  ;;  %v2454_v30 = vpop.permute.xlu1 %287  ;;  %v2458_v36 = vmul.f32 %v2214_v23, %v2393_v16  ;;  %v2462_v46 = vmul.f32 %v2271_v11, %v2395_v51  ;;  %v2466_v40 = vmul.f32 %v2225_v33, %v2393_v16 }
  0x82   :  { %3575 = vst [vmem:[#allocation56_spill] sm:$0xff] %v2444_v28  ;;  %3576 = vst [vmem:[#allocation57_spill] sm:$0xff] %v2448_v62  ;;  %v2470_v4 = vmul.f32 %v2277_v15, %v2395_v51  ;;  %v2472_v25 = vpop.permute.xlu0 %583  ;;  %v2476_v34 = vmul.f32 %v2126_v39, %v2454_v30  ;;  %v2480_v7 = vmul.f32 %v2149_v52, %v2454_v30 }
  0x83   :  { %3577 = vst [vmem:[#allocation58_spill] sm:$0xff] %v2452_v41  ;;  %3578 = vst [vmem:[#allocation59_spill] sm:$0xff] %v2454_v30  ;;  %v2484_v2 = vmul.f32 %v2137_v45, %v2454_v30  ;;  %v2488_v60 = vmul.f32 %v2185_v9, %v2454_v30  ;;  %v775_v57 = vmul.f32 %v2133_v43, %v2472_v25 }
  0x84   :  { %3579 = vst [vmem:[#allocation60_spill] sm:$0xff] %v2458_v36  ;;  %3580 = vst [vmem:[#allocation61_spill] sm:$0xff] %v2462_v46  ;;  %v777_v61 = vmul.f32 %v2154_v55, %v2472_v25  ;;  %v774_v6 = vmul.f32 %v2165_v63, %v2472_v25  ;;  %v776_v58 = vmul.f32 %v2188_v10, %v2472_v25 }
  0x85   :  { %3581 = vst [vmem:[#allocation62_spill] sm:$0xff] %v2466_v40  ;;  %3582 = vst [vmem:[#allocation63_spill] sm:$0xff] %v2470_v4  ;;  %v2500_v24 = vmul.f32 %v2198_v14, %v2454_v30  ;;  %v2504_v26 = vmul.f32 %v2206_v18, %v2472_v25  ;;  %v2508_v21 = vmul.f32 %v2211_v20, %v2454_v30 }
  0x86   :  { %3583 = vst [vmem:[#allocation64_spill] sm:$0xff] %v2472_v25  ;;  %v2512_v1 = vmul.f32 %v2233_v38, %v2472_v25  ;;  %v2516_v4 = vmul.f32 %v2214_v23, %v2454_v30  ;;  %v2520_v14 = vmul.f32 %v2245_v54, %v2472_v25  ;;  %v2524_v15 = vmul.f32 %v2225_v33, %v2454_v30  ;;  %v2530_v40 = vpop.permute.xlu1 %587  ;;  %v2532_v46 = vpop.permute.xlu0 %579 }
  0x87   :  { %3584 = vst [vmem:[#allocation65_spill] sm:$0xff] %v2508_v21  ;;  %v2528_v20 = vmul.f32 %v2274_v12, %v2472_v25  ;;  %3590 = vst [vmem:[#allocation71_spill] sm:$0xff] %v2530_v40  ;;  %v2536_v23 = vmul.f32 %v2287_v27, %v2393_v16  ;;  %v2540_v11 = vmul.f32 %v2287_v27, %v2454_v30 }
  0x88   :  { %3585 = vst [vmem:[#allocation66_spill] sm:$0xff] %v2512_v1  ;;  %3586 = vst [vmem:[#allocation67_spill] sm:$0xff] %v2516_v4  ;;  %v2544_v33 = vmul.f32 %v2295_v42, %v2472_v25  ;;  %v792_v27 = vmul.f32 %v2188_v10, %v2530_v40  ;;  %v2580_v4 = vmul.f32 %v2233_v38, %v2530_v40 }
  0x89   :  { %3587 = vst [vmem:[#allocation68_spill] sm:$0xff] %v2520_v14  ;;  %3588 = vst [vmem:[#allocation69_spill] sm:$0xff] %v2524_v15  ;;  %v2548_v15 = vmul.f32 %v2306_v53, %v2395_v51  ;;  %v793_v14 = vmul.f32 %v2154_v55, %v2530_v40  ;;  %v2564_v51 = vmul.f32 %v2154_v55, %v2532_v46 }
  0x8a   :  { %3589 = vst [vmem:[#allocation70_spill] sm:$0xff] %v2528_v20  ;;  %3591 = vst [vmem:[#allocation72_spill] sm:$0xff] %v2532_v46  ;;  %v791_v20 = vmul.f32 %v2133_v43, %v2530_v40  ;;  %v2576_v53 = vmul.f32 %v2206_v18, %v2530_v40  ;;  %v2584_v36 = vmul.f32 %v2245_v54, %v2530_v40 }
  0x8b   :  { %3592 = vst [vmem:[#allocation73_spill] sm:$0xff] %v2536_v23  ;;  %3593 = vst [vmem:[#allocation74_spill] sm:$0xff] %v2540_v11  ;;  %v790_v23 = vmul.f32 %v2165_v63, %v2530_v40  ;;  %v2560_v11 = vmul.f32 %v2133_v43, %v2532_v46  ;;  %v2588_v41 = vmul.f32 %v2274_v12, %v2530_v40  ;;  %v2608_v62 = vpop.permute.xlu1 %40 }
  0x8c   :  { %3594 = vst [vmem:[#allocation75_spill] sm:$0xff] %v2544_v33  ;;  %3595 = vst [vmem:[#allocation76_spill] sm:$0xff] %v2548_v15  ;;  %v2568_v15 = vmul.f32 %v2165_v63, %v2532_v46  ;;  %v2572_v33 = vmul.f32 %v2188_v10, %v2532_v46  ;;  %v2592_v1 = vmul.f32 %v2206_v18, %v2532_v46 }
  0x8d   :  { %3597 = vst [vmem:[#allocation78_spill] sm:$0xff] %v2576_v53  ;;  %3598 = vst [vmem:[#allocation79_spill] sm:$0xff] %v2580_v4  ;;  %v2596_v0 = vmul.f32 %v2233_v38, %v2532_v46  ;;  %v2600_v21 = vmul.f32 %v2245_v54, %v2532_v46  ;;  %v2604_v4 = vmul.f32 %v2274_v12, %v2532_v46 }
  0x8e   :  { %3596 = vst [vmem:[#allocation77_spill] sm:$0xff] %v2572_v33  ;;  %3599 = vst [vmem:[#allocation80_spill] sm:$0xff] %v2584_v36  ;;  %v2606_v36 = vpop.permute.xlu0 %50  ;;  %v2612_v18 = vmul.f32 %v2295_v42, %v2530_v40  ;;  %v2616_v38 = vmul.f32 %v2290_v32, %v2393_v16  ;;  %v2620_v54 = vmul.f32 %v2290_v32, %v2454_v30  ;;  %v3611_v16 = vld [vmem:[#allocation9_spill] sm:$0xff] }
  0x8f   :  { %3600 = vst [vmem:[#allocation81_spill] sm:$0xff] %v2588_v41  ;;  %3601 = vst [vmem:[#allocation82_spill] sm:$0xff] %v2592_v1  ;;  %v2624_v46 = vmul.f32 %v2298_v29, %v2472_v25  ;;  %v245_v12 = vmul.f32 %v2143_v48, %v2606_v36  ;;  %v242_v42 = vmul.f32 %v2160_v59, %v2606_v36  ;;  %v3613_v41 = vld [vmem:[#allocation16_spill] sm:$0xff] }
  0x90   :  { %3602 = vst [vmem:[#allocation83_spill] sm:$0xff] %v2596_v0  ;;  %3603 = vst [vmem:[#allocation84_spill] sm:$0xff] %v2600_v21  ;;  %v211_v32 = vmul.f32 %v2140_v47, %v2608_v62  ;;  %v213_v30 = vmul.f32 %v2143_v48, %v2608_v62  ;;  %v210_v25 = vmul.f32 %v2160_v59, %v2608_v62  ;;  %v3612_v0 = vld [vmem:[#allocation14_spill] sm:$0xff] }
  0x91   :  { %3604 = vst [vmem:[#allocation85_spill] sm:$0xff] %v2604_v4  ;;  %3605 = vst [vmem:[#allocation86_spill] sm:$0xff] %v2606_v36  ;;  %v243_v4 = vmul.f32 %v2140_v47, %v2606_v36  ;;  %v533_v29 = vadd.f32 %v2416_v37, %v245_v12  ;;  %v530_v40 = vadd.f32 %v2424_v19, %v242_v42  ;;  %v3617_v12 = vld [vmem:[#allocation21_spill] sm:$0xff]  ;;  %v2666_v42 = vpop.permute.xlu1 %275 }
  0x92   :  { %3606 = vst [vmem:[#allocation87_spill] sm:$0xff] %v2608_v62  ;;  %3607 = vst [vmem:[#allocation88_spill] sm:$0xff] %v2612_v18  ;;  %v2648_v21 = vpop.permute.xlu0 %55  ;;  %v2652_v1 = vmul.f32 %v3612_v0, %v2606_v36  ;;  %v2656_v28 = vmul.f32 %v3613_v41, %v2606_v36 }
  0x93   :  { %3608 = vst [vmem:[#allocation89_spill] sm:$0xff] %v2616_v38  ;;  %3609 = vst [vmem:[#allocation90_spill] sm:$0xff] %v2620_v54  ;;  %v244_v38 = vmul.f32 %v3611_v16, %v2606_v36  ;;  %v531_v54 = vadd.f32 %v2408_v22, %v243_v4  ;;  %v2664_v4 = vmul.f32 %v3617_v12, %v2606_v36 }
  0x94   :  { %3610 = vst [vmem:[#allocation91_spill] sm:$0xff] %v2624_v46  ;;  %v2642_v46 = vmul.f32 %v3611_v16, %v2608_v62  ;;  %3614 = vst [vmem:[#allocation9_spill] sm:$0xff] %v2656_v28  ;;  %v3615_v62 = vld [vmem:[#allocation19_spill] sm:$0xff]  ;;  %v261_v19 = vmul.f32 %v2143_v48, %v2648_v21  ;;  %v841_v22 = vadd.f32 %v777_v61, %v533_v29 }
  0x95   :  { %v532_v18 = vadd.f32 %v2432_v49, %v244_v38  ;;  %v2660_v53 = vmul.f32 %v3615_v62, %v2606_v36  ;;  %3618 = vst [vmem:[#allocation16_spill] sm:$0xff] %v2664_v4  ;;  %v259_v38 = vmul.f32 %v2140_v47, %v2648_v21  ;;  %v839_v49 = vadd.f32 %v775_v57, %v531_v54  ;;  %v2686_v33 = vpop.permute.xlu1 %279 }
  0x96   :  { %v258_v37 = vmul.f32 %v2160_v59, %v2648_v21  ;;  %v838_v28 = vadd.f32 %v774_v6, %v530_v40  ;;  %v549_v12 = vadd.f32 %v2480_v7, %v261_v19  ;;  %v1129_v54 = vadd.f32 %v2420_v35, %v841_v22  ;;  %v2680_v57 = vpop.permute.xlu0 %45 }
  0x97   :  { %3616 = vst [vmem:[#allocation14_spill] sm:$0xff] %v2660_v53  ;;  %v260_v53 = vmul.f32 %v3611_v16, %v2648_v21  ;;  %v840_v62 = vadd.f32 %v776_v58, %v532_v18  ;;  %v547_v36 = vadd.f32 %v2476_v34, %v259_v38  ;;  %v1127_v4 = vadd.f32 %v2412_v17, %v839_v49 }
  0x98   :  { %v546_v29 = vadd.f32 %v2484_v2, %v258_v37  ;;  %v1126_v61 = vadd.f32 %v2428_v31, %v838_v28  ;;  %v857_v58 = vadd.f32 %v793_v14, %v549_v12  ;;  %v227_v34 = vmul.f32 %v2140_v47, %v2680_v57 }
  0x99   :  { %v548_v40 = vadd.f32 %v2488_v60, %v260_v53  ;;  %v1128_v6 = vadd.f32 %v2436_v56, %v840_v62  ;;  %v855_v18 = vadd.f32 %v791_v20, %v547_v36  ;;  %v435_v7 = vmul.f32 %v2126_v39, %v2666_v42  ;;  %v2722_v62 = vpop.permute.xlu1 %883 }
  0x9a   :  { %v854_v17 = vadd.f32 %v790_v23, %v546_v29  ;;  %v451_v2 = vmul.f32 %v2126_v39, %v2686_v33  ;;  %v229_v28 = vmul.f32 %v2143_v48, %v2680_v57  ;;  %v437_v60 = vmul.f32 %v2149_v52, %v2666_v42  ;;  %v2702_v14 = vpop.permute.xlu0 %1174 }
  0x9b   :  { %v856_v35 = vadd.f32 %v792_v27, %v548_v40  ;;  %v499_v53 = vadd.f32 %v435_v7, %v211_v32  ;;  %v453_v36 = vmul.f32 %v2149_v52, %v2686_v33  ;;  %v226_v47 = vmul.f32 %v2160_v59, %v2680_v57 }
  0x9c   :  { %v515_v20 = vadd.f32 %v451_v2, %v227_v34  ;;  %v434_v23 = vmul.f32 %v2137_v45, %v2666_v42  ;;  %v450_v39 = vmul.f32 %v2137_v45, %v2686_v33  ;;  %v228_v48 = vmul.f32 %v3611_v16, %v2680_v57 }
  0x9d   :  { %v2711_v27 = vadd.f32 %v2702_v14, %v1127_v4  ;;  %v2714_v52 = vadd.f32 %v2702_v14, %v1129_v54  ;;  %v2717_v59 = vadd.f32 %v2702_v14, %v1126_v61  ;;  %v2720_v32 = vadd.f32 %v2702_v14, %v1128_v6 }
  0x9e   :  { %v2725_v56 = vadd.f32 %v2560_v11, %v515_v20  ;;  %v501_v45 = vadd.f32 %v437_v60, %v213_v30  ;;  %v517_v31 = vadd.f32 %v453_v36, %v229_v28  ;;  %v498_v16 = vadd.f32 %v434_v23, %v210_v25  ;;  %v2752_v7 = vpop.permute.xlu1 %575  ;;  %v3619_v23 = vld [vmem:[#allocation77_spill] sm:$0xff] }
  0x9f   :  { %v1079_v12 = vmul.f32 %v2172_v3, %v2722_v62  ;;  %v1279_v4 = vmax.f32 %v2711_v27, 0.0  ;;  %v1081_v38 = vmul.f32 %v2175_v5, %v2722_v62  ;;  %v1281_v49 = vmax.f32 %v2714_v52, 0.0 }
  0xa0   :  { %v1078_v19 = vmul.f32 %v2182_v8, %v2722_v62  ;;  %v1278_v22 = vmax.f32 %v2717_v59, 0.0  ;;  %v1080_v30 = vmul.f32 %v2195_v13, %v2722_v62  ;;  %v1280_v11 = vmax.f32 %v2720_v32, 0.0 }
  0xa1   :  { %v2739_v25 = vadd.f32 %v1079_v12, %v855_v18  ;;  %v2741_v37 = vadd.f32 %v1081_v38, %v857_v58  ;;  %v825_v54 = vadd.f32 %v2564_v51, %v517_v31  ;;  %v514_v29 = vadd.f32 %v450_v39, %v226_v47  ;;  %v3623_v38 = vld [vmem:[#allocation57_spill] sm:$0xff] }
  0xa2   :  { %v2744_v61 = vadd.f32 %v1078_v19, %v854_v17  ;;  %v2746_v40 = vadd.f32 %v1080_v30, %v856_v35  ;;  %v436_v6 = vmul.f32 %v2185_v9, %v2666_v42  ;;  %v452_v34 = vmul.f32 %v2185_v9, %v2686_v33  ;;  %v3624_v19 = vld [vmem:[#allocation65_spill] sm:$0xff] }
  0xa3   :  { %v822_v18 = vadd.f32 %v2568_v15, %v514_v29  ;;  %v263_v58 = vmul.f32 %v3612_v0, %v2648_v21  ;;  %v535_v51 = vadd.f32 %v2440_v50, %v2652_v1  ;;  %v1083_v17 = vmul.f32 %v2238_v44, %v2722_v62  ;;  %v2777_v12 = vpop.permute.xlu1 %871 }
  0xa4   :  { %v743_v35 = vmul.f32 %v2133_v43, %v2752_v7  ;;  %v745_v2 = vmul.f32 %v2154_v55, %v2752_v7  ;;  %v742_v9 = vmul.f32 %v2165_v63, %v2752_v7  ;;  %v500_v15 = vadd.f32 %v436_v6, %v2642_v46  ;;  %v3620_v63 = vld [vmem:[#allocation78_spill] sm:$0xff]  ;;  %v3621_v46 = vld [vmem:[#allocation56_spill] sm:$0xff] }
  0xa5   :  { %v516_v28 = vadd.f32 %v452_v34, %v228_v48  ;;  %v744_v60 = vmul.f32 %v2188_v10, %v2752_v7  ;;  %v551_v1 = vadd.f32 %v2500_v24, %v263_v58  ;;  %v843_v50 = vadd.f32 %v2504_v26, %v535_v51  ;;  %v3622_v10 = vld [vmem:[#allocation9_spill] sm:$0xff] }
  0xa6   :  { %v807_v36 = vadd.f32 %v743_v35, %v499_v53  ;;  %v809_v47 = vadd.f32 %v745_v2, %v501_v45  ;;  %v806_v20 = vadd.f32 %v742_v9, %v498_v16  ;;  %v265_v43 = vmul.f32 %v3613_v41, %v2648_v21  ;;  %v3625_v53 = vld [vmem:[#allocation20_spill] sm:$0xff]  ;;  %v3626_v16 = vld [vmem:[#allocation19_spill] sm:$0xff]  ;;  %v3627_v2 = vld [vmem:[#allocation66_spill] sm:$0xff] }
  0xa7   :  { %v808_v55 = vadd.f32 %v744_v60, %v500_v15  ;;  %v824_v39 = vadd.f32 %v3619_v23, %v516_v28  ;;  %v859_v31 = vadd.f32 %v3620_v63, %v551_v1  ;;  %v1131_v48 = vadd.f32 %v3621_v46, %v843_v50  ;;  %v3628_v15 = vld [vmem:[#allocation79_spill] sm:$0xff]  ;;  %v2799_v23 = vpop.permute.xlu1 %875  ;;  %v3629_v46 = vld [vmem:[#allocation58_spill] sm:$0xff] }
  0xa8   :  { %v537_v24 = vadd.f32 %v3623_v38, %v3622_v10  ;;  %v553_v26 = vadd.f32 %v3624_v19, %v265_v43  ;;  %v1085_v45 = vmul.f32 %v3625_v53, %v2722_v62  ;;  %v262_v30 = vmul.f32 %v3626_v16, %v2648_v21  ;;  %v3630_v19 = vld [vmem:[#allocation14_spill] sm:$0xff] }
  0xa9   :  { %v1031_v29 = vmul.f32 %v2172_v3, %v2777_v12  ;;  %v1033_v6 = vmul.f32 %v2175_v5, %v2777_v12  ;;  %v1030_v34 = vmul.f32 %v2182_v8, %v2777_v12  ;;  %v1032_v58 = vmul.f32 %v2195_v13, %v2777_v12 }
  0xaa   :  { %v1147_v51 = vadd.f32 %v1083_v17, %v859_v31  ;;  %v2795_v35 = vadd.f32 %v2702_v14, %v1131_v48  ;;  %v845_v9 = vadd.f32 %v3627_v2, %v537_v24  ;;  %v861_v28 = vadd.f32 %v3628_v15, %v553_v26  ;;  %v3631_v17 = vld [vmem:[#allocation60_spill] sm:$0xff] }
  0xab   :  { %v1095_v60 = vadd.f32 %v1031_v29, %v807_v36  ;;  %v1097_v1 = vadd.f32 %v1033_v6, %v809_v47  ;;  %v1094_v50 = vadd.f32 %v1030_v34, %v806_v20  ;;  %v1096_v43 = vadd.f32 %v1032_v58, %v808_v55  ;;  %v3632_v55 = vld [vmem:[#allocation67_spill] sm:$0xff]  ;;  %v3634_v6 = vld [vmem:[#allocation22_spill] sm:$0xff]  ;;  %v3635_v15 = vld [vmem:[#allocation80_spill] sm:$0xff] }
  0xac   :  { %v1283_v63 = vmax.f32 %v2795_v35, 0.0  ;;  %v1133_v10 = vadd.f32 %v3629_v46, %v845_v9  ;;  %v1149_v38 = vadd.f32 %v1085_v45, %v861_v28  ;;  %v534_v31 = vadd.f32 %v3631_v17, %v3630_v19  ;;  %v3633_v45 = vld [vmem:[#allocation68_spill] sm:$0xff]  ;;  %v2819_v9 = vpop.permute.xlu0 %1169  ;;  %v2825_v19 = vpop.permute.xlu1 %1179  ;;  %v2868_v35 = vld [vmem:[%s3437_s3] sm:$0xff]  }
  0xad   :  { %v1047_v48 = vmul.f32 %v2172_v3, %v2799_v23  ;;  %v1049_v24 = vmul.f32 %v2175_v5, %v2799_v23  ;;  %v1046_v36 = vmul.f32 %v2182_v8, %v2799_v23  ;;  %v1048_v47 = vmul.f32 %v2195_v13, %v2799_v23  ;;  %v3636_v13 = vld [vmem:[#allocation61_spill] sm:$0xff] }
  0xae   :  { %v1221_v20 = vadd.f32 %v2702_v14, %v1133_v10  ;;  %v550_v26 = vadd.f32 %v3632_v55, %v262_v30  ;;  %v842_v29 = vadd.f32 %v3633_v45, %v534_v31  ;;  %v1082_v34 = vmul.f32 %v3634_v6, %v2722_v62  ;;  %v3637_v10 = vld [vmem:[#allocation21_spill] sm:$0xff] }
  0xaf   :  { %v1111_v3 = vadd.f32 %v1047_v48, %v2725_v56  ;;  %v1113_v58 = vadd.f32 %v1049_v24, %v825_v54  ;;  %v1110_v2 = vadd.f32 %v1046_v36, %v822_v18  ;;  %v1112_v5 = vadd.f32 %v1048_v47, %v824_v39 }
  0xb0   :  { %v1285_v8 = vmax.f32 %v1221_v20, 0.0  ;;  %v858_v28 = vadd.f32 %v3635_v15, %v550_v26  ;;  %v1130_v46 = vadd.f32 %v3636_v13, %v842_v29  ;;  %v264_v30 = vmul.f32 %v3637_v10, %v2648_v21 }
  0xb1   :  { %v1199_v17 = vadd.f32 %v2819_v9, %v1111_v3  ;;  %v1201_v31 = vadd.f32 %v2819_v9, %v1113_v58  ;;  %v1198_v56 = vadd.f32 %v2819_v9, %v1110_v2  ;;  %v1200_v54 = vadd.f32 %v2819_v9, %v1112_v5  ;;  %v2839_v58 = vpop.permute.xlu1 %1164 }
  0xb2   :  { %v1231_v18 = vadd.f32 %v2825_v19, %v2739_v25  ;;  %v1233_v39 = vadd.f32 %v2825_v19, %v2741_v37  ;;  %v1230_v48 = vadd.f32 %v2825_v19, %v2744_v61  ;;  %v1232_v24 = vadd.f32 %v2825_v19, %v2746_v40 }
  0xb3   :  { %v1263_v36 = vmax.f32 %v1199_v17, 0.0  ;;  %v1265_v47 = vmax.f32 %v1201_v31, 0.0  ;;  %v1262_v20 = vmax.f32 %v1198_v56, 0.0  ;;  %v1264_v55 = vmax.f32 %v1200_v54, 0.0 }
  0xb4   :  { %v1295_v26 = vmax.f32 %v1231_v18, 0.0  ;;  %v1297_v45 = vmax.f32 %v1233_v39, 0.0  ;;  %v1294_v29 = vmax.f32 %v1230_v48, 0.0  ;;  %v1296_v3 = vmax.f32 %v1232_v24, 0.0  ;;  %v3640_v48 = vld [vmem:[#allocation69_spill] sm:$0xff] }
  0xb5   :  { %v1235_v25 = vadd.f32 %v2825_v19, %v1147_v51  ;;  %v1237_v37 = vadd.f32 %v2825_v19, %v1149_v38  ;;  %v1146_v2 = vadd.f32 %v1082_v34, %v858_v28  ;;  %v1218_v61 = vadd.f32 %v2702_v14, %v1130_v46  ;;  %v3638_v28 = vld [vmem:[#allocation16_spill] sm:$0xff] }
  0xb6   :  { %v1331_v40 = vpack.c.bf16 %v1295_v26, %v1279_v4  ;;  %v1333_v5 = vpack.c.bf16 %v1297_v45, %v1281_v49  ;;  %v1330_v15 = vpack.c.bf16 %v1294_v29, %v1278_v22  ;;  %v1332_v13 = vpack.c.bf16 %v1296_v3, %v1280_v11  ;;  %v3641_v26 = vld [vmem:[#allocation70_spill] sm:$0xff]  ;;  %v3642_v29 = vld [vmem:[#allocation24_spill] sm:$0xff] }
  0xb7   :  { %v1183_v17 = vadd.f32 %v2839_v58, %v1095_v60  ;;  %v1185_v51 = vadd.f32 %v2839_v58, %v1097_v1  ;;  %v1182_v38 = vadd.f32 %v2839_v58, %v1094_v50  ;;  %v1184_v34 = vadd.f32 %v2839_v58, %v1096_v43  ;;  %v3639_v43 = vld [vmem:[#allocation62_spill] sm:$0xff] }
  0xb8   :  { %1399 = vmatprep.subr.bf16.mxu0 %v1331_v40  ;;  %1452 = vmatprep.subr.bf16.mxu1 %v1333_v5  ;;  %v1299_v27 = vmax.f32 %v1235_v25, 0.0  ;;  %v1301_v4 = vmax.f32 %v1237_v37, 0.0  ;;  %v1234_v52 = vadd.f32 %v2825_v19, %v1146_v2  ;;  %v1282_v49 = vmax.f32 %v1218_v61, 0.0  ;;  %v3646_v25 = vld [vmem:[#allocation63_spill] sm:$0xff] }
  0xb9   :  { %1400 = vmatpush1.bf16.msra.mxu0 %v1330_v15  ;;  %1453 = vmatpush1.bf16.msra.mxu1 %v1332_v13  ;;  %v1247_v59 = vmax.f32 %v1183_v17, 0.0  ;;  %v1249_v32 = vmax.f32 %v1185_v51, 0.0  ;;  %v1246_v22 = vmax.f32 %v1182_v38, 0.0  ;;  %v1248_v11 = vmax.f32 %v1184_v34, 0.0  ;;  %v3647_v40 = vld [vmem:[#allocation11_spill] sm:$0xff] }
  0xba   :  { %v1335_v60 = vpack.c.bf16 %v1299_v27, %v1283_v63  ;;  %v1337_v1 = vpack.c.bf16 %v1301_v4, %v1285_v8  ;;  %v1298_v50 = vmax.f32 %v1234_v52, 0.0  ;;  %v536_v46 = vadd.f32 %v3639_v43, %v3638_v28  ;;  %v3643_v63 = vld [vmem:[#allocation87_spill] sm:$0xff] }
  0xbb   :  { %v1315_v31 = vpack.c.bf16 %v1263_v36, %v1247_v59  ;;  %v1317_v56 = vpack.c.bf16 %v1265_v47, %v1249_v32  ;;  %v1314_v54 = vpack.c.bf16 %v1262_v20, %v1246_v22  ;;  %v1316_v18 = vpack.c.bf16 %v1264_v55, %v1248_v11  ;;  %v3645_v20 = vld [vmem:[#allocation81_spill] sm:$0xff] }
  0xbc   :  { %v1334_v39 = vpack.c.bf16 %v1298_v50, %v1282_v49  ;;  %v552_v24 = vadd.f32 %v3640_v48, %v264_v30  ;;  %v844_v45 = vadd.f32 %v3641_v26, %v536_v46  ;;  %v1084_v3 = vmul.f32 %v3642_v29, %v2722_v62  ;;  %v3644_v30 = vld [vmem:[#allocation10_spill] sm:$0xff] }
  0xbd   :  { %1401 = vmatprep.subr.bf16.mxu0 %v1315_v31  ;;  %1454 = vmatprep.subr.bf16.mxu1 %v1317_v56  ;;  %v215_v8 = vmul.f32 %v3612_v0, %v3643_v63  ;;  %v231_v36 = vmul.f32 %v3612_v0, %v2680_v57  ;;  %v439_v47 = vmul.f32 %v3644_v30, %v2666_v42  ;;  %v3648_v49 = vld [vmem:[#allocation82_spill] sm:$0xff]  ;;  %v3650_v22 = vmov 0  }
  0xbe   :  { %1402 = vmatpush1.bf16.msra.mxu0 %v1314_v54  ;;  %1455 = vmatpush1.bf16.msra.mxu1 %v1316_v18  ;;  %v860_v55 = vadd.f32 %v3645_v20, %v552_v24  ;;  %v1132_v37 = vadd.f32 %v3646_v25, %v844_v45  ;;  %v455_v2 = vmul.f32 %v3644_v30, %v2686_v33  ;;  %v2917_v48 = vld [vmem:[%s3437_s3 + $0x8] sm:$0xff]   ;;  %s2019_s3 = smov [#allocation2]  }
  0xbf   :  { %1505 = vmatprep.subr.bf16.mxu0 %v1335_v60  ;;  %1558 = vmatprep.subr.bf16.mxu1 %v1337_v1  ;;  %v503_v61 = vadd.f32 %v439_v47, %v215_v8  ;;  %v747_v5 = vmul.f32 %v3647_v40, %v2752_v7  ;;  %v1035_v0 = vmul.f32 %v2238_v44, %v2777_v12  ;;  %v3651_v1 = vld [vmem:[#allocation17_spill] sm:$0xff]  ;;  %s1944_s7 = sshll.u32 %s2019_s3, 4  ;;  %s1945_s7 = int_to_ptr.vmem [resolvable:$true] %s1944_s7 }
  0xc0   :  { %v1148_v15 = vadd.f32 %v1084_v3, %v860_v55  ;;  %v1220_v13 = vadd.f32 %v2702_v14, %v1132_v37  ;;  %v519_v17 = vadd.f32 %v455_v2, %v231_v36  ;;  %v1051_v51 = vmul.f32 %v2238_v44, %v2799_v23  ;;  %v3649_v44 = vld [vmem:[#allocation12_spill] sm:$0xff]  ;;  %v3653_v36 = vld [vmem:[#allocation83_spill] sm:$0xff]  ;;  %s1993_s8 = scalar_lea.vmem %s1945_s7, 512  ;;  %p1998_p1 = scmp.lt.s32.totalorder %s1945_s7, %s1945_s7 }
  0xc1   :  { %1957 = vmatmul.mubr.msk.bf16.vlgmr.msra.gmra.mxu0 %vm1380_vm0, %v2868_v35  ;;  %1959 = vmatmul.mubr.msk.bf16.vlgmr.msra.gmra.mxu1 %vm1380_vm0, %v2868_v35  ;;  %v811_v38 = vadd.f32 %v747_v5, %v503_v61  ;;  %v217_v34 = vmul.f32 %v3613_v41, %v3643_v63  ;;  %v233_v27 = vmul.f32 %v3613_v41, %v2680_v57  ;;  %p1994_p0 = scmp.ne.s32.totalorder %s1945_s7, %s1993_s8  ;;  %p1999_p2 = scmp.lt.s32.totalorder %s1993_s8, %s1993_s8 }
  0xc2   :  { %1506 = vmatpush1.bf16.msra.mxu0 %v1334_v39  ;;  %v1236_v4 = vadd.f32 %v2825_v19, %v1148_v15  ;;  %v1284_v52 = vmax.f32 %v1220_v13, 0.0  ;;  %v827_v59 = vadd.f32 %v3648_v49, %v519_v17  ;;  %v441_v32 = vmul.f32 %v3649_v44, %v2666_v42  ;;  %1429 = vmatprep.mubr.bf16.mxu0 %v3650_v22 }
  0xc3   :  { %v1099_v11 = vadd.f32 %v1035_v0, %v811_v38  ;;  %v457_v60 = vmul.f32 %v3649_v44, %v2686_v33  ;;  %v749_v50 = vmul.f32 %v3651_v1, %v2752_v7  ;;  %v1037_v41 = vmul.f32 %v3625_v53, %v2777_v12  ;;  %1482 = vmatprep.mubr.bf16.mxu1 %v3650_v22  ;;  %p2000_p3 = por %p1999_p2, %p1998_p1 }
  0xc4   :  { %v1300_v28 = vmax.f32 %v1236_v4, 0.0  ;;  %v1115_v43 = vadd.f32 %v1051_v51, %v827_v59  ;;  %v505_v46 = vadd.f32 %v441_v32, %v217_v34  ;;  %v1053_v31 = vmul.f32 %v3625_v53, %v2799_v23  ;;  %v3652_v53 = vld [vmem:[#allocation13_spill] sm:$0xff]  ;;  %v3655_v34 = vld [vmem:[#allocation84_spill] sm:$0xff] }
  0xc5   :  { %v1187_v56 = vadd.f32 %v2839_v58, %v1099_v11  ;;  %v521_v54 = vadd.f32 %v457_v60, %v233_v27  ;;  %v214_v18 = vmul.f32 %v3626_v16, %v3643_v63  ;;  %v230_v39 = vmul.f32 %v3626_v16, %v2680_v57  ;;  %v3654_v16 = vld [vmem:[#allocation18_spill] sm:$0xff]  ;;  %v3656_v27 = vld [vmem:[#allocation15_spill] sm:$0xff]  ;;  %p2001_p4 = pnand %p2000_p3, %p1994_p0 }
  0xc6   :  { %v1336_v24 = vpack.c.bf16 %v1300_v28, %v1284_v52  ;;  %v1203_v26 = vadd.f32 %v2819_v9, %v1115_v43  ;;  %v813_v45 = vadd.f32 %v749_v50, %v505_v46  ;;  %v438_v3 = vmul.f32 %v3652_v53, %v2666_v42  ;;  %v3658_v43 = vld [vmem:[#allocation86_spill] sm:$0xff]  ;;  %v3659_v46 = vld [vmem:[#allocation25_spill] sm:$0xff] }
  0xc7   :  { %v1251_v8 = vmax.f32 %v1187_v56, 0.0  ;;  %v829_v30 = vadd.f32 %v3653_v36, %v521_v54  ;;  %v454_v47 = vmul.f32 %v3652_v53, %v2686_v33  ;;  %v746_v20 = vmul.f32 %v3654_v16, %v2752_v7  ;;  %v3661_v53 = vld [vmem:[#allocation73_spill] sm:$0xff] }
  0xc8   :  { %1559 = vmatpush1.bf16.msra.mxu1 %v1336_v24  ;;  %v1267_v55 = vmax.f32 %v1203_v26, 0.0  ;;  %v1101_v25 = vadd.f32 %v1037_v41, %v813_v45  ;;  %v502_v37 = vadd.f32 %v438_v3, %v214_v18  ;;  %v1034_v2 = vmul.f32 %v3634_v6, %v2777_v12  ;;  %v3660_v24 = vld [vmem:[#allocation85_spill] sm:$0xff] }
  0xc9   :  { %v1117_v61 = vadd.f32 %v1053_v31, %v829_v30  ;;  %v518_v40 = vadd.f32 %v454_v47, %v230_v39  ;;  %v1050_v5 = vmul.f32 %v3634_v6, %v2799_v23  ;;  %v216_v0 = vmul.f32 %v3637_v10, %v3643_v63  ;;  %1958 = vmatmul.mubr.msk.bf16.gmra.mxu0 %vm1380_vm0, %v2917_v48  ;;  %v3663_v30 = vld [vmem:[#allocation33_spill] sm:$0xff] }
  0xca   :  { %v1319_v15 = vpack.c.bf16 %v1267_v55, %v1251_v8  ;;  %v1189_v13 = vadd.f32 %v2839_v58, %v1101_v25  ;;  %v810_v17 = vadd.f32 %v746_v20, %v502_v37  ;;  %v232_v51 = vmul.f32 %v3637_v10, %v2680_v57  ;;  %1960 = vmatmul.mubr.msk.bf16.gmra.mxu1 %vm1380_vm0, %v2917_v48  ;;  %v3657_v10 = vld [vmem:[#allocation23_spill] sm:$0xff]  ;;  %v3662_v8 = vld [vmem:[#allocation74_spill] sm:$0xff] }
  0xcb   :  { %v1205_v38 = vadd.f32 %v2819_v9, %v1117_v61  ;;  %v826_v6 = vadd.f32 %v3655_v34, %v518_v40  ;;  %v440_v4 = vmul.f32 %v3656_v27, %v2666_v42  ;;  %v456_v52 = vmul.f32 %v3656_v27, %v2686_v33  ;;  %1525 = vmatprep.mubr.bf16.mxu0 %v3650_v22  ;;  %v3664_v55 = vld [vmem:[#allocation34_spill] sm:$0xff]  ;;  %v3665_v37 = vld [vmem:[#allocation75_spill] sm:$0xff]  ;;  %v3666_v61 = vld [vmem:[#allocation88_spill] sm:$0xff] }
  0xcc   :  { %1507 = vmatprep.subr.bf16.mxu0 %v1319_v15  ;;  %v1253_v49 = vmax.f32 %v1189_v13, 0.0  ;;  %v1098_v59 = vadd.f32 %v1034_v2, %v810_v17  ;;  %v748_v44 = vmul.f32 %v3657_v10, %v2752_v7  ;;  %v1036_v32 = vmul.f32 %v3642_v29, %v2777_v12  ;;  %1578 = vmatprep.mubr.bf16.mxu1 %v3650_v22  ;;  %v3668_v15 = vld [vmem:[#allocation30_spill] sm:$0xff]  ;;  %v3669_v34 = vld [vmem:[#allocation89_spill] sm:$0xff]  ;;  %v3670_v27 = vld [vmem:[#allocation76_spill] sm:$0xff] }
  0xcd   :  { %v1269_v11 = vmax.f32 %v1205_v38, 0.0  ;;  %v1114_v60 = vadd.f32 %v1050_v5, %v826_v6  ;;  %v504_v1 = vadd.f32 %v440_v4, %v216_v0  ;;  %v520_v50 = vadd.f32 %v456_v52, %v232_v51  ;;  %v3667_v0 = vld [vmem:[#allocation71_spill] sm:$0xff]  ;;  %v3672_v10 = vld [vmem:[#allocation54_spill] sm:$0xff] }
  0xce   :  { %v1186_v41 = vadd.f32 %v2839_v58, %v1098_v59  ;;  %v1052_v28 = vmul.f32 %v3642_v29, %v2799_v23  ;;  %v251_v31 = vmul.f32 %v3659_v46, %v3658_v43  ;;  %v267_v56 = vmul.f32 %v3659_v46, %v2648_v21 }
  0xcf   :  { %v1321_v54 = vpack.c.bf16 %v1269_v11, %v1253_v49  ;;  %v1202_v18 = vadd.f32 %v2819_v9, %v1114_v60  ;;  %v812_v39 = vadd.f32 %v748_v44, %v504_v1  ;;  %v828_v26 = vadd.f32 %v3660_v24, %v520_v50  ;;  %v3671_v49 = vld [vmem:[#allocation90_spill] sm:$0xff]  ;;  %v3674_v1 = vld [vmem:[#allocation91_spill] sm:$0xff] }
  0xd0   :  { %v1250_v45 = vmax.f32 %v1186_v41, 0.0  ;;  %v539_v3 = vadd.f32 %v3661_v53, %v251_v31  ;;  %v555_v36 = vadd.f32 %v3662_v8, %v267_v56  ;;  %v1087_v29 = vmul.f32 %v3663_v30, %v2722_v62  ;;  %v3673_v44 = vld [vmem:[#allocation38_spill] sm:$0xff]  ;;  %v3677_v53 = vld [vmem:[#allocation31_spill] sm:$0xff] }
  0xd1   :  { %1560 = vmatprep.subr.bf16.mxu1 %v1321_v54  ;;  %v1266_v47 = vmax.f32 %v1202_v18, 0.0  ;;  %v1100_v16 = vadd.f32 %v1036_v32, %v812_v39  ;;  %v1116_v20 = vadd.f32 %v1052_v28, %v828_v26  ;;  %v253_v25 = vmul.f32 %v3664_v55, %v3658_v43  ;;  %v3675_v54 = vld [vmem:[#allocation36_spill] sm:$0xff] }
  0xd2   :  { %v847_v2 = vadd.f32 %v3665_v37, %v539_v3  ;;  %v863_v40 = vadd.f32 %v3666_v61, %v555_v36  ;;  %v269_v5 = vmul.f32 %v3664_v55, %v2648_v21  ;;  %v801_v13 = vmul.f32 %v3668_v15, %v3667_v0  ;;  %v3679_v37 = vld [vmem:[#allocation64_spill] sm:$0xff] }
  0xd3   :  { %v1318_v17 = vpack.c.bf16 %v1266_v47, %v1250_v45  ;;  %v1188_v51 = vadd.f32 %v2839_v58, %v1100_v16  ;;  %v1204_v38 = vadd.f32 %v2819_v9, %v1116_v20  ;;  %v541_v6 = vadd.f32 %v3669_v34, %v253_v25  ;;  %v3676_v45 = vld [vmem:[#allocation53_spill] sm:$0xff]  ;;  %v3678_v47 = vld [vmem:[#allocation59_spill] sm:$0xff] }
  0xd4   :  { %v1135_v4 = vadd.f32 %v3670_v27, %v847_v2  ;;  %v1151_v52 = vadd.f32 %v1087_v29, %v863_v40  ;;  %v557_v59 = vadd.f32 %v3671_v49, %v269_v5  ;;  %v1073_v32 = vmul.f32 %v3673_v44, %v3672_v10  ;;  %v3680_v2 = vld [vmem:[#allocation39_spill] sm:$0xff] }
  0xd5   :  { %1508 = vmatpush1.bf16.msra.mxu0 %v1318_v17  ;;  %v1252_v11 = vmax.f32 %v1188_v51, 0.0  ;;  %v1268_v60 = vmax.f32 %v1204_v38, 0.0  ;;  %v849_v50 = vadd.f32 %v3674_v1, %v541_v6  ;;  %v1089_v41 = vmul.f32 %v3673_v44, %v2722_v62  ;;  %v3681_v51 = vld [vmem:[#allocation41_spill] sm:$0xff] }
  0xd6   :  { %v1223_v28 = vadd.f32 %v2702_v14, %v1135_v4  ;;  %v1239_v31 = vadd.f32 %v2825_v19, %v1151_v52  ;;  %v865_v56 = vadd.f32 %v801_v13, %v557_v59  ;;  %v250_v18 = vmul.f32 %v3675_v54, %v3658_v43  ;;  %v3682_v4 = vld [vmem:[#allocation42_spill] sm:$0xff] }
  0xd7   :  { %v1320_v39 = vpack.c.bf16 %v1268_v60, %v1252_v11  ;;  %v1137_v24 = vadd.f32 %v1073_v32, %v849_v50  ;;  %v266_v26 = vmul.f32 %v3675_v54, %v2648_v21  ;;  %v474_v3 = vmul.f32 %v3677_v53, %v3676_v45  ;;  %v3683_v11 = vld [vmem:[#allocation40_spill] sm:$0xff] }
  0xd8   :  { %v1287_v8 = vmax.f32 %v1223_v28, 0.0  ;;  %v1303_v36 = vmax.f32 %v1239_v31, 0.0  ;;  %v1153_v29 = vadd.f32 %v1089_v41, %v865_v56  ;;  %1961 = vmatmul.mubr.msk.bf16.vlgmr.msra.gmra.mxu0 %vm1380_vm0, %v2868_v35  ;;  %v490_v16 = vmul.f32 %v3677_v53, %v3678_v47  ;;  %v3684_v41 = vld [vmem:[#allocation43_spill] sm:$0xff] }
  0xd9   :  { %1561 = vmatpush1.bf16.msra.mxu1 %v1320_v39  ;;  %v1225_v20 = vadd.f32 %v2702_v14, %v1137_v24  ;;  %v538_v25 = vadd.f32 %v474_v3, %v250_v18  ;;  %v782_v61 = vmul.f32 %v3680_v2, %v3679_v37  ;;  %v798_v40 = vmul.f32 %v3680_v2, %v3667_v0  ;;  %v3685_v24 = vld [vmem:[#allocation45_spill] sm:$0xff] }
  0xda   :  { %v1339_v5 = vpack.c.bf16 %v1303_v36, %v1287_v8  ;;  %v1241_v13 = vadd.f32 %v2825_v19, %v1153_v29  ;;  %v554_v17 = vadd.f32 %v490_v16, %v266_v26  ;;  %v1070_v38 = vmul.f32 %v3681_v51, %v3672_v10  ;;  %1535 = vmatprep.mubr.bf16.mxu0 %v3650_v22 }
  0xdb   :  { %v1289_v34 = vmax.f32 %v1225_v20, 0.0  ;;  %v846_v6 = vadd.f32 %v782_v61, %v538_v25  ;;  %v1086_v27 = vmul.f32 %v3681_v51, %v2722_v62  ;;  %v252_v52 = vmul.f32 %v3682_v4, %v3658_v43  ;;  %v3686_v61 = vld [vmem:[#allocation26_spill] sm:$0xff] }
  0xdc   :  { %1611 = vmatprep.subr.bf16.mxu0 %v1339_v5  ;;  %v1305_v49 = vmax.f32 %v1241_v13, 0.0  ;;  %1963 = vmatmul.mubr.msk.bf16.vlgmr.msra.gmra.mxu1 %vm1380_vm0, %v2868_v35  ;;  %v862_v59 = vadd.f32 %v798_v40, %v554_v17  ;;  %v268_v32 = vmul.f32 %v3682_v4, %v2648_v21  ;;  %v476_v60 = vmul.f32 %v3683_v11, %v3676_v45 }
  0xdd   :  { %v1134_v1 = vadd.f32 %v1070_v38, %v846_v6  ;;  %v492_v50 = vmul.f32 %v3683_v11, %v3678_v47  ;;  %v784_v28 = vmul.f32 %v3684_v41, %v3679_v37  ;;  %v800_v31 = vmul.f32 %v3684_v41, %v3667_v0  ;;  %1588 = vmatprep.mubr.bf16.mxu1 %v3650_v22  ;;  %v3687_v38 = vld [vmem:[#allocation29_spill] sm:$0xff] }
  0xde   :  { %v1341_v56 = vpack.c.bf16 %v1305_v49, %v1289_v34  ;;  %v1150_v18 = vadd.f32 %v1086_v27, %v862_v59  ;;  %v540_v39 = vadd.f32 %v476_v60, %v252_v52  ;;  %v1072_v26 = vmul.f32 %v3685_v24, %v3672_v10  ;;  %v3688_v49 = vld [vmem:[#allocation72_spill] sm:$0xff] }
  0xdf   :  { %v1222_v3 = vadd.f32 %v2702_v14, %v1134_v1  ;;  %v556_v8 = vadd.f32 %v492_v50, %v268_v32  ;;  %v1088_v36 = vmul.f32 %v3685_v24, %v2722_v62  ;;  %v219_v29 = vmul.f32 %v3659_v46, %v3643_v63 }
  0xe0   :  { %1664 = vmatprep.subr.bf16.mxu1 %v1341_v56  ;;  %v1238_v16 = vadd.f32 %v2825_v19, %v1150_v18  ;;  %v848_v20 = vadd.f32 %v784_v28, %v540_v39  ;;  %v235_v25 = vmul.f32 %v3659_v46, %v2680_v57  ;;  %v443_v40 = vmul.f32 %v3686_v61, %v2666_v42 }
  0xe1   :  { %v1286_v5 = vmax.f32 %v1222_v3, 0.0  ;;  %v864_v13 = vadd.f32 %v800_v31, %v556_v8  ;;  %v459_v17 = vmul.f32 %v3686_v61, %v2686_v33  ;;  %v751_v34 = vmul.f32 %v3687_v38, %v2752_v7  ;;  %1962 = vmatmul.mubr.msk.bf16.gmra.mxu0 %vm1380_vm0, %v2917_v48  ;;  %v3689_v3 = vld [vmem:[#allocation27_spill] sm:$0xff] }
  0xe2   :  { %v1302_v6 = vmax.f32 %v1238_v16, 0.0  ;;  %v1136_v27 = vadd.f32 %v1072_v26, %v848_v20  ;;  %v507_v52 = vadd.f32 %v443_v40, %v219_v29  ;;  %v767_v46 = vmul.f32 %v3687_v38, %v3688_v49  ;;  %1631 = vmatprep.mubr.bf16.mxu0 %v3650_v22 }
  0xe3   :  { %v1152_v59 = vadd.f32 %v1088_v36, %v864_v13  ;;  %v523_v32 = vadd.f32 %v459_v17, %v235_v25  ;;  %v1039_v60 = vmul.f32 %v3663_v30, %v2777_v12  ;;  %v1055_v1 = vmul.f32 %v3663_v30, %v2799_v23 }
  0xe4   :  { %v1338_v50 = vpack.c.bf16 %v1302_v6, %v1286_v5  ;;  %v1224_v28 = vadd.f32 %v2702_v14, %v1136_v27  ;;  %v815_v31 = vadd.f32 %v751_v34, %v507_v52  ;;  %v221_v56 = vmul.f32 %v3664_v55, %v3643_v63  ;;  %1964 = vmatmul.mubr.msk.bf16.gmra.mxu1 %vm1380_vm0, %v2917_v48 }
  0xe5   :  { %v1240_v18 = vadd.f32 %v2825_v19, %v1152_v59  ;;  %v831_v39 = vadd.f32 %v767_v46, %v523_v32  ;;  %v237_v26 = vmul.f32 %v3664_v55, %v2680_v57  ;;  %v445_v8 = vmul.f32 %v3689_v3, %v2666_v42  ;;  %1684 = vmatprep.mubr.bf16.mxu1 %v3650_v22 }
  0xe6   :  { %1612 = vmatpush1.bf16.msra.mxu0 %v1338_v50  ;;  %v1288_v30 = vmax.f32 %v1224_v28, 0.0  ;;  %v1103_v36 = vadd.f32 %v1039_v60, %v815_v31  ;;  %v461_v29 = vmul.f32 %v3689_v3, %v2686_v33  ;;  %v753_v16 = vmul.f32 %v3668_v15, %v2752_v7 }
  0xe7   :  { %v1304_v20 = vmax.f32 %v1240_v18, 0.0  ;;  %v1119_v25 = vadd.f32 %v1055_v1, %v831_v39  ;;  %v509_v61 = vadd.f32 %v445_v8, %v221_v56  ;;  %v769_v55 = vmul.f32 %v3668_v15, %v3688_v49 }
  0xe8   :  { %v1191_v40 = vadd.f32 %v2839_v58, %v1103_v36  ;;  %v525_v5 = vadd.f32 %v461_v29, %v237_v26  ;;  %v1041_v13 = vmul.f32 %v3673_v44, %v2777_v12  ;;  %v1057_v17 = vmul.f32 %v3673_v44, %v2799_v23 }
  0xe9   :  { %v1340_v38 = vpack.c.bf16 %v1304_v20, %v1288_v30  ;;  %v1207_v34 = vadd.f32 %v2819_v9, %v1119_v25  ;;  %v817_v6 = vadd.f32 %v753_v16, %v509_v61  ;;  %v218_v27 = vmul.f32 %v3675_v54, %v3643_v63 }
  0xea   :  { %v1255_v52 = vmax.f32 %v1191_v40, 0.0  ;;  %v833_v46 = vadd.f32 %v769_v55, %v525_v5  ;;  %v234_v15 = vmul.f32 %v3675_v54, %v2680_v57  ;;  %v442_v59 = vmul.f32 %v3677_v53, %v2666_v42 }
  0xeb   :  { %1665 = vmatpush1.bf16.msra.mxu1 %v1340_v38  ;;  %v1271_v32 = vmax.f32 %v1207_v34, 0.0  ;;  %v1105_v60 = vadd.f32 %v1041_v13, %v817_v6  ;;  %v458_v44 = vmul.f32 %v3677_v53, %v2686_v33  ;;  %v750_v1 = vmul.f32 %v3680_v2, %v2752_v7  ;;  %v3690_v38 = vld [vmem:[#allocation46_spill] sm:$0xff] }
  0xec   :  { %v1121_v50 = vadd.f32 %v1057_v17, %v833_v46  ;;  %v506_v28 = vadd.f32 %v442_v59, %v218_v27  ;;  %v766_v31 = vmul.f32 %v3680_v2, %v3688_v49  ;;  %v1038_v54 = vmul.f32 %v3681_v51, %v2777_v12 }
  0xed   :  { %v1323_v56 = vpack.c.bf16 %v1271_v32, %v1255_v52  ;;  %v1193_v18 = vadd.f32 %v2839_v58, %v1105_v60  ;;  %v522_v39 = vadd.f32 %v458_v44, %v234_v15  ;;  %v1054_v26 = vmul.f32 %v3681_v51, %v2799_v23  ;;  %v3691_v15 = vld [vmem:[#allocation44_spill] sm:$0xff] }
  0xee   :  { %v1209_v53 = vadd.f32 %v2819_v9, %v1121_v50  ;;  %v814_v3 = vadd.f32 %v750_v1, %v506_v28  ;;  %v220_v8 = vmul.f32 %v3682_v4, %v3643_v63  ;;  %v236_v30 = vmul.f32 %v3682_v4, %v2680_v57 }
  0xef   :  { %1613 = vmatprep.subr.bf16.mxu0 %v1323_v56  ;;  %v1257_v2 = vmax.f32 %v1193_v18, 0.0  ;;  %v830_v36 = vadd.f32 %v766_v31, %v522_v39  ;;  %v444_v29 = vmul.f32 %v3683_v11, %v2666_v42  ;;  %v460_v16 = vmul.f32 %v3683_v11, %v2686_v33  ;;  %v3693_v56 = vld [vmem:[#allocation50_spill] sm:$0xff] }
  0xf0   :  { %v1273_v20 = vmax.f32 %v1209_v53, 0.0  ;;  %v1102_v51 = vadd.f32 %v1038_v54, %v814_v3  ;;  %v752_v25 = vmul.f32 %v3684_v41, %v2752_v7  ;;  %v768_v61 = vmul.f32 %v3684_v41, %v3688_v49 }
  0xf1   :  { %v1118_v55 = vadd.f32 %v1054_v26, %v830_v36  ;;  %v508_v40 = vadd.f32 %v444_v29, %v220_v8  ;;  %v524_v4 = vadd.f32 %v460_v16, %v236_v30  ;;  %v1040_v5 = vmul.f32 %v3685_v24, %v2777_v12  ;;  %v3694_v8 = vld [vmem:[#allocation55_spill] sm:$0xff] }
  0xf2   :  { %v1325_v13 = vpack.c.bf16 %v1273_v20, %v1257_v2  ;;  %v1190_v17 = vadd.f32 %v2839_v58, %v1102_v51  ;;  %v1056_v11 = vmul.f32 %v3685_v24, %v2799_v23  ;;  %v255_v34 = vmul.f32 %v3690_v38, %v3658_v43  ;;  %v3692_v24 = vld [vmem:[#allocation49_spill] sm:$0xff]  ;;  %v3695_v16 = vld [vmem:[#allocation47_spill] sm:$0xff] }
  0xf3   :  { %v1206_v6 = vadd.f32 %v2819_v9, %v1118_v55  ;;  %v816_v27 = vadd.f32 %v752_v25, %v508_v40  ;;  %v832_v52 = vadd.f32 %v768_v61, %v524_v4  ;;  %v271_v41 = vmul.f32 %v3690_v38, %v2648_v21  ;;  %v3696_v55 = vld [vmem:[#allocation51_spill] sm:$0xff] }
  0xf4   :  { %1666 = vmatprep.subr.bf16.mxu1 %v1325_v13  ;;  %v1254_v46 = vmax.f32 %v1190_v17, 0.0  ;;  %v479_v59 = vmul.f32 %v3691_v15, %v3676_v45  ;;  %v495_v32 = vmul.f32 %v3691_v15, %v3678_v47  ;;  %v787_v60 = vmul.f32 %v3692_v24, %v3679_v37 }
  0xf5   :  { %v1270_v44 = vmax.f32 %v1206_v6, 0.0  ;;  %v1104_v1 = vadd.f32 %v1040_v5, %v816_v27  ;;  %v1120_v50 = vadd.f32 %v1056_v11, %v832_v52  ;;  %v803_v28 = vmul.f32 %v3692_v24, %v3667_v0  ;;  %v3697_v6 = vld [vmem:[#allocation8_spill] sm:$0xff]  ;;  %v3698_v27 = vld [vmem:[#allocation37_spill] sm:$0xff]  ;;  %v3699_v52 = vld [vmem:[#allocation7_spill] sm:$0xff] }
  0xf6   :  { %v543_v31 = vadd.f32 %v479_v59, %v255_v34  ;;  %v559_v54 = vadd.f32 %v495_v32, %v271_v41  ;;  %v1075_v18 = vmul.f32 %v3693_v56, %v3672_v10  ;;  %v1091_v39 = vmul.f32 %v3693_v56, %v2722_v62  ;;  %v3701_v59 = vld [vmem:[#allocation6_spill] sm:$0xff]  ;;  %v3702_v32 = vld [vmem:[#allocation28_spill] sm:$0xff] }
  0xf7   :  { %v1322_v26 = vpack.c.bf16 %v1270_v44, %v1254_v46  ;;  %v1192_v53 = vadd.f32 %v2839_v58, %v1104_v1  ;;  %v1208_v3 = vadd.f32 %v2819_v9, %v1120_v50  ;;  %v257_v30 = vmul.f32 %v3694_v8, %v3658_v43 }
  0xf8   :  { %v851_v2 = vadd.f32 %v787_v60, %v543_v31  ;;  %v867_v36 = vadd.f32 %v803_v28, %v559_v54  ;;  %v273_v29 = vmul.f32 %v3694_v8, %v2648_v21  ;;  %v481_v20 = vmul.f32 %v3695_v16, %v3676_v45  ;;  %v3704_v31 = vld [vmem:[#allocation48_spill] sm:$0xff] }
  0xf9   :  { %1614 = vmatpush1.bf16.msra.mxu0 %v1322_v26  ;;  %v1256_v51 = vmax.f32 %v1192_v53, 0.0  ;;  %v1272_v25 = vmax.f32 %v1208_v3, 0.0  ;;  %v497_v61 = vmul.f32 %v3695_v16, %v3678_v47  ;;  %v789_v40 = vmul.f32 %v3696_v55, %v3679_v37 }
  0xfa   :  { %v1139_v4 = vadd.f32 %v1075_v18, %v851_v2  ;;  %v1155_v5 = vadd.f32 %v1091_v39, %v867_v36  ;;  %v545_v13 = vadd.f32 %v481_v20, %v257_v30  ;;  %v805_v17 = vmul.f32 %v3696_v55, %v3667_v0 }
  0xfb   :  { %v1324_v11 = vpack.c.bf16 %v1272_v25, %v1256_v51  ;;  %v561_v34 = vadd.f32 %v497_v61, %v273_v29  ;;  %v3700_v41 = vrot.slane %v3698_v27, %v3699_v52  ;;  %v3703_v60 = vrot.slane %v3702_v32, %v3701_v59  ;;  %v3705_v25 = vld [vmem:[#allocation5_spill] sm:$0xff]  ;;  %v3706_v61 = vld [vmem:[#allocation35_spill] sm:$0xff] }
  0xfc   :  { %v1227_v1 = vadd.f32 %v2702_v14, %v1139_v4  ;;  %v1243_v50 = vadd.f32 %v2825_v19, %v1155_v5  ;;  %v853_v28 = vadd.f32 %v789_v40, %v545_v13  ;;  %1965 = vmatmul.mubr.msk.bf16.vlgmr.msra.gmra.mxu0 %vm1380_vm0, %v2868_v35  ;;  %v478_v54 = vmul.f32 %v3704_v31, %v3676_v45 }
  0xfd   :  { %v3139_v46 = vrot.slane %v3700_v41, %v3697_v6  ;;  %v3145_v44 = vrot.slane %v3703_v60, %v3701_v59  ;;  %1667 = vmatpush1.bf16.msra.mxu1 %v1324_v11  ;;  %v869_v18 = vadd.f32 %v805_v17, %v561_v34  ;;  %v494_v36 = vmul.f32 %v3704_v31, %v3678_v47  ;;  %v3708_v11 = vld [vmem:[#allocation32_spill] sm:$0xff] }
  0xfe   :  { %v1291_v3 = vmax.f32 %v1227_v1, 0.0  ;;  %v1307_v30 = vmax.f32 %v1243_v50, 0.0  ;;  %1641 = vmatprep.mubr.bf16.mxu0 %v3650_v22  ;;  %v3707_v40 = vrot.slane %v3706_v61, %v3705_v25  ;;  %v937_v17 = vrot.slane %v3706_v61, %v3697_v6 }
  0xff   :  { %v1077_v39 = vmul.f32 %v3139_v46, %v3672_v10  ;;  %v1093_v26 = vmul.f32 %v3139_v46, %v2722_v62  ;;  %v254_v53 = vmul.f32 %v3145_v44, %v3658_v43  ;;  %v270_v2 = vmul.f32 %v3145_v44, %v2648_v21 }
 0x100   :  { %v3168_v4 = vrot.slane %v3707_v40, %v3705_v25  ;;  %v1343_v5 = vpack.c.bf16 %v1307_v30, %v1291_v3  ;;  %1967 = vmatmul.mubr.msk.bf16.vlgmr.msra.gmra.mxu1 %vm1380_vm0, %v2868_v35  ;;  %v125_v34 = vrot.slane %v3708_v11, %v3701_v59  ;;  %v3184_v1 = vrot.slane %v937_v17, %v3697_v6 }
 0x101   :  { %v1141_v29 = vadd.f32 %v1077_v39, %v853_v28  ;;  %v1157_v20 = vadd.f32 %v1093_v26, %v869_v18  ;;  %v542_v51 = vadd.f32 %v478_v54, %v254_v53  ;;  %v558_v13 = vadd.f32 %v494_v36, %v270_v2  ;;  %1694 = vmatprep.mubr.bf16.mxu1 %v3650_v22  ;;  %v3709_v28 = vld [vmem:[#allocation52_spill] sm:$0xff] }
 0x102   :  { %v786_v32 = vmul.f32 %v3168_v4, %v3679_v37  ;;  %v802_v60 = vmul.f32 %v3168_v4, %v3667_v0  ;;  %1717 = vmatprep.subr.bf16.mxu0 %v1343_v5  ;;  %v3187_v50 = vrot.slane %v125_v34, %v3701_v59  ;;  %v480_v54 = vmul.f32 %v3709_v28, %v3676_v45 }
 0x103   :  { %v1229_v52 = vadd.f32 %v2702_v14, %v1141_v29  ;;  %v1245_v41 = vadd.f32 %v2825_v19, %v1157_v20  ;;  %v496_v18 = vmul.f32 %v3709_v28, %v3678_v47  ;;  %v1074_v30 = vmul.f32 %v3184_v1, %v3672_v10 }
 0x104   :  { %v850_v53 = vadd.f32 %v786_v32, %v542_v51  ;;  %v866_v3 = vadd.f32 %v802_v60, %v558_v13  ;;  %v1090_v2 = vmul.f32 %v3184_v1, %v2722_v62  ;;  %v256_v59 = vmul.f32 %v3187_v50, %v3658_v43  ;;  %1966 = vmatmul.mubr.msk.bf16.gmra.mxu0 %vm1380_vm0, %v2917_v48 }
 0x105   :  { %v1293_v39 = vmax.f32 %v1229_v52, 0.0  ;;  %v1309_v26 = vmax.f32 %v1245_v41, 0.0  ;;  %v272_v36 = vmul.f32 %v3187_v50, %v2648_v21  ;;  %v657_v47 = vrot.slane %v3698_v27, %v3705_v25  ;;  %1737 = vmatprep.mubr.bf16.mxu0 %v3650_v22 }
 0x106   :  { %v945_v29 = vrot.slane %v3698_v27, %v3697_v6  ;;  %v223_v20 = vmul.f32 %v3690_v38, %v3643_v63  ;;  %v1138_v51 = vadd.f32 %v1074_v30, %v850_v53  ;;  %v1154_v43 = vadd.f32 %v1090_v2, %v866_v3 }
 0x107   :  { %v1345_v45 = vpack.c.bf16 %v1309_v26, %v1293_v39  ;;  %v544_v61 = vadd.f32 %v480_v54, %v256_v59  ;;  %v560_v40 = vadd.f32 %v496_v18, %v272_v36  ;;  %v3211_v21 = vrot.slane %v657_v47, %v3705_v25 }
 0x108   :  { %v3214_v5 = vrot.slane %v945_v29, %v3697_v6  ;;  %v239_v13 = vmul.f32 %v3690_v38, %v2680_v57  ;;  %v447_v27 = vmul.f32 %v3691_v15, %v2666_v42  ;;  %v1226_v17 = vadd.f32 %v2702_v14, %v1138_v51  ;;  %1968 = vmatmul.mubr.msk.bf16.gmra.mxu1 %vm1380_vm0, %v2917_v48 }
 0x109   :  { %1770 = vmatprep.subr.bf16.mxu1 %v1345_v45  ;;  %v1242_v11 = vadd.f32 %v2825_v19, %v1154_v43  ;;  %v463_v34 = vmul.f32 %v3691_v15, %v2686_v33  ;;  %v755_v25 = vmul.f32 %v3692_v24, %v2752_v7  ;;  %v788_v6 = vmul.f32 %v3211_v21, %v3679_v37 }
 0x10a   :  { %v804_v38 = vmul.f32 %v3211_v21, %v3667_v0  ;;  %v1076_v52 = vmul.f32 %v3214_v5, %v3672_v10  ;;  %v1092_v41 = vmul.f32 %v3214_v5, %v2722_v62  ;;  %1790 = vmatprep.mubr.bf16.mxu1 %v3650_v22  ;;  %v1290_v15 = vmax.f32 %v1226_v17, 0.0 }
 0x10b   :  { %v1306_v32 = vmax.f32 %v1242_v11, 0.0  ;;  %v511_v60 = vadd.f32 %v447_v27, %v223_v20  ;;  %v527_v54 = vadd.f32 %v463_v34, %v239_v13  ;;  %v852_v18 = vadd.f32 %v788_v6, %v544_v61 }
 0x10c   :  { %v868_v39 = vadd.f32 %v804_v38, %v560_v40  ;;  %v771_v37 = vmul.f32 %v3692_v24, %v3688_v49  ;;  %v1043_v0 = vmul.f32 %v3693_v56, %v2777_v12  ;;  %v1059_v10 = vmul.f32 %v3693_v56, %v2799_v23 }
 0x10d   :  { %v1342_v26 = vpack.c.bf16 %v1306_v32, %v1290_v15  ;;  %v819_v53 = vadd.f32 %v755_v25, %v511_v60  ;;  %v225_v62 = vmul.f32 %v3694_v8, %v3643_v63  ;;  %v1140_v3 = vadd.f32 %v1076_v52, %v852_v18 }
 0x10e   :  { %v1156_v30 = vadd.f32 %v1092_v41, %v868_v39  ;;  %v835_v2 = vadd.f32 %v771_v37, %v527_v54  ;;  %v241_v59 = vmul.f32 %v3694_v8, %v2680_v57  ;;  %v449_v24 = vmul.f32 %v3695_v16, %v2666_v42 }
 0x10f   :  { %1718 = vmatpush1.bf16.msra.mxu0 %v1342_v26  ;;  %v1107_v36 = vadd.f32 %v1043_v0, %v819_v53  ;;  %v465_v45 = vmul.f32 %v3695_v16, %v2686_v33  ;;  %v757_v56 = vmul.f32 %v3696_v55, %v2752_v7  ;;  %v1228_v47 = vadd.f32 %v2702_v14, %v1140_v3 }
 0x110   :  { %v1244_v29 = vadd.f32 %v2825_v19, %v1156_v30  ;;  %v1123_v20 = vadd.f32 %v1059_v10, %v835_v2  ;;  %v773_v51 = vmul.f32 %v3696_v55, %v3688_v49  ;;  %v513_v43 = vadd.f32 %v449_v24, %v225_v62 }
 0x111   :  { %v1195_v8 = vadd.f32 %v2839_v58, %v1107_v36  ;;  %v529_v61 = vadd.f32 %v465_v45, %v241_v59  ;;  %v1045_v40 = vmul.f32 %v3139_v46, %v2777_v12  ;;  %v1292_v13 = vmax.f32 %v1228_v47, 0.0 }
 0x112   :  { %v1308_v16 = vmax.f32 %v1244_v29, 0.0  ;;  %v1211_v27 = vadd.f32 %v2819_v9, %v1123_v20  ;;  %v1061_v14 = vmul.f32 %v3139_v46, %v2799_v23  ;;  %v821_v19 = vadd.f32 %v757_v56, %v513_v43 }
 0x113   :  { %v1259_v17 = vmax.f32 %v1195_v8, 0.0  ;;  %v837_v11 = vadd.f32 %v773_v51, %v529_v61  ;;  %v222_v55 = vmul.f32 %v3145_v44, %v3643_v63  ;;  %v238_v6 = vmul.f32 %v3145_v44, %v2680_v57 }
 0x114   :  { %v1344_v34 = vpack.c.bf16 %v1308_v16, %v1292_v13  ;;  %v1275_v25 = vmax.f32 %v1211_v27, 0.0  ;;  %v446_v38 = vmul.f32 %v3704_v31, %v2666_v42  ;;  %v1109_v52 = vadd.f32 %v1045_v40, %v821_v19 }
 0x115   :  { %v1125_v41 = vadd.f32 %v1061_v14, %v837_v11  ;;  %v462_v15 = vmul.f32 %v3704_v31, %v2686_v33  ;;  %v754_v46 = vmul.f32 %v3168_v4, %v2752_v7  ;;  %v770_v54 = vmul.f32 %v3168_v4, %v3688_v49 }
 0x116   :  { %1771 = vmatpush1.bf16.msra.mxu1 %v1344_v34  ;;  %v1327_v32 = vpack.c.bf16 %v1275_v25, %v1259_v17  ;;  %v510_v60 = vadd.f32 %v446_v38, %v222_v55  ;;  %v1042_v44 = vmul.f32 %v3184_v1, %v2777_v12  ;;  %v1197_v18 = vadd.f32 %v2839_v58, %v1109_v52 }
 0x117   :  { %v1213_v39 = vadd.f32 %v2819_v9, %v1125_v41  ;;  %v526_v37 = vadd.f32 %v462_v15, %v238_v6  ;;  %v1058_v31 = vmul.f32 %v3184_v1, %v2799_v23  ;;  %v224_v26 = vmul.f32 %v3187_v50, %v3643_v63 }
 0x118   :  { %1719 = vmatprep.subr.bf16.mxu0 %v1327_v32  ;;  %v818_v0 = vadd.f32 %v754_v46, %v510_v60  ;;  %v240_v53 = vmul.f32 %v3187_v50, %v2680_v57  ;;  %v448_v4 = vmul.f32 %v3709_v28, %v2666_v42  ;;  %v1261_v10 = vmax.f32 %v1197_v18, 0.0 }
 0x119   :  { %v1277_v62 = vmax.f32 %v1213_v39, 0.0  ;;  %v834_v3 = vadd.f32 %v770_v54, %v526_v37  ;;  %v464_v30 = vmul.f32 %v3709_v28, %v2686_v33  ;;  %v756_v1 = vmul.f32 %v3211_v21, %v2752_v7  ;;  %v3329_v54 = vpop.permute.xlu1 %1352  ;;  %v3334_v37 = vpop.permute.xlu0 %1357 }
 0x11a   :  { %v1106_v2 = vadd.f32 %v1042_v44, %v818_v0  ;;  %v512_v59 = vadd.f32 %v448_v4, %v224_v26  ;;  %v772_v63 = vmul.f32 %v3211_v21, %v3688_v49  ;;  %v1044_v42 = vmul.f32 %v3214_v5, %v2777_v12 }
 0x11b   :  { %v1329_v36 = vpack.c.bf16 %v1277_v62, %v1261_v10  ;;  %v1122_v24 = vadd.f32 %v1058_v31, %v834_v3  ;;  %v528_v57 = vadd.f32 %v464_v30, %v240_v53  ;;  %v1060_v33 = vmul.f32 %v3214_v5, %v2799_v23 }
 0x11c   :  { %v1194_v50 = vadd.f32 %v2839_v58, %v1106_v2  ;;  %v820_v45 = vadd.f32 %v756_v1, %v512_v59 }
 0x11d   :  { %1772 = vmatprep.subr.bf16.mxu1 %v1329_v36  ;;  %v1210_v28 = vadd.f32 %v2819_v9, %v1122_v24  ;;  %v836_v56 = vadd.f32 %v772_v63, %v528_v57  ;;  %v3344_v2 = vpop.permute.xlu1 %1362  ;;  %v3347_v36 = vpop.permute.xlu0 %1367 }
 0x11e   :  { %v1258_v7 = vmax.f32 %v1194_v50, 0.0  ;;  %v1108_v47 = vadd.f32 %v1044_v42, %v820_v45 }
 0x11f   :  { %v1274_v29 = vmax.f32 %v1210_v28, 0.0  ;;  %v1124_v49 = vadd.f32 %v1060_v33, %v836_v56 }
 0x120   :  { %v1196_v21 = vadd.f32 %v2839_v58, %v1108_v47 }
 0x121   :  { %v1326_v20 = vpack.c.bf16 %v1274_v29, %v1258_v7  ;;  %v1212_v51 = vadd.f32 %v2819_v9, %v1124_v49 }
 0x122   :  { %v1260_v12 = vmax.f32 %v1196_v21, 0.0 }
 0x123   :  { %1720 = vmatpush1.bf16.msra.mxu0 %v1326_v20  ;;  %v1276_v8 = vmax.f32 %v1212_v51, 0.0 }
 0x125   :  { %v1328_v43 = vpack.c.bf16 %v1276_v8, %v1260_v12 }
 0x126   :  { %1969 = vmatmul.mubr.msk.bf16.vlgmr.msra.gmra.mxu0 %vm1380_vm0, %v2868_v35 }
 0x127   :  { %1773 = vmatpush1.bf16.msra.mxu1 %v1328_v43  ;;  %1747 = vmatprep.mubr.bf16.mxu0 %v3650_v22 }
 0x12a   :  { %1971 = vmatmul.mubr.msk.bf16.vlgmr.msra.gmra.mxu1 %vm1380_vm0, %v2868_v35 }
 0x12b   :  { %1800 = vmatprep.mubr.bf16.mxu1 %v3650_v22 }
 0x12e   :  { %1970 = vmatmul.mubr.msk.bf16.gmra.mxu0 %vm1380_vm0, %v2917_v48 }
 0x132   :  { %1972 = vmatmul.mubr.msk.bf16.gmra.mxu1 %vm1380_vm0, %v2917_v48 }
 0x181   :  { %v1421_v23 = vpop.f32.mrf.mxu0  ;;  %v1474_v58 = vpop.f32.mrf.mxu1 }
 0x182   :  { %v1422_v31 = vadd.f32 %v1421_v23, %v3329_v54  ;;  %v1475_v3 = vadd.f32 %v1474_v58, %v3329_v54 }
 0x183   :  { %v1423_v9 = vpop.f32.mrf.mxu0  ;;  %v1476_v61 = vpop.f32.mrf.mxu1 }
 0x184   :  { %v1424_v44 = vadd.f32 %v1423_v9, %v3329_v54  ;;  %v1811_v62 = vmax.f32 %v1422_v31, 0.0  ;;  %v1477_v1 = vadd.f32 %v1476_v61, %v3329_v54  ;;  %v1813_v45 = vmax.f32 %v1475_v3, 0.0 }
 0x185   :  { %v1425_v5 = vpop.f32.mrf.mxu0  ;;  %v1478_v13 = vpop.f32.mrf.mxu1 }
 0x186   :  { %v1812_v26 = vmax.f32 %v1424_v44, 0.0  ;;  %v1426_v4 = vadd.f32 %v1425_v5, %v3334_v37  ;;  %v1479_v57 = vadd.f32 %v1478_v13, %v3334_v37  ;;  %v1814_v47 = vmax.f32 %v1477_v1, 0.0 }
 0x187   :  { %v1427_v40 = vpop.f32.mrf.mxu0  ;;  %v1480_v27 = vpop.f32.mrf.mxu1 }
 0x188   :  { %v1428_v0 = vadd.f32 %v1427_v40, %v3334_v37  ;;  %v1875_v59 = vmax.f32 %v1811_v62, %v1812_v26  ;;  %v1827_v24 = vmax.f32 %v1426_v4, 0.0  ;;  %v1829_v20 = vmax.f32 %v1479_v57, 0.0 }
 0x189   :  { %v1431_v16 = vpop.f32.mrf.mxu0  ;;  %v1481_v51 = vadd.f32 %v1480_v27, %v3334_v37 }
 0x18a   :  { %v1484_v17 = vpop.f32.mrf.mxu1  ;;  %v1828_v30 = vmax.f32 %v1428_v0, 0.0  ;;  %v1432_v7 = vadd.f32 %v1431_v16, %v3344_v2  ;;  %v1879_v29 = vmax.f32 %v1875_v59, %v1813_v45 }
 0x18b   :  { %v1433_v14 = vpop.f32.mrf.mxu0  ;;  %v1485_v23 = vadd.f32 %v1484_v17, %v3344_v2 }
 0x18c   :  { %v3311_v19 = vpop.f32.mrf.mxu1  ;;  %v1434_v42 = vadd.f32 %v1433_v14, %v3344_v2  ;;  %v1876_v56 = vmax.f32 %v1827_v24, %v1828_v30  ;;  %v1843_v40 = vmax.f32 %v1432_v7, 0.0  ;;  %v1883_v13 = vmax.f32 %v1879_v29, %v1814_v47 }
 0x18d   :  { %v1435_v35 = vpop.f32.mrf.mxu0  ;;  %v1845_v31 = vmax.f32 %v1485_v23, 0.0 }
 0x18e   :  { %v1488_v11 = vpop.f32.mrf.mxu1  ;;  %v1436_v49 = vadd.f32 %v1435_v35, %v3347_v36  ;;  %v1844_v12 = vmax.f32 %v1434_v42, 0.0  ;;  %v1880_v61 = vmax.f32 %v1876_v56, %v1829_v20 }
 0x18f   :  { %v1437_v22 = vpop.f32.mrf.mxu0  ;;  %v1489_v14 = vadd.f32 %v1488_v11, %v3347_v36 }
 0x190   :  { %v3313_v34 = vpop.f32.mrf.mxu1  ;;  %v1438_v33 = vadd.f32 %v1437_v22, %v3347_v36  ;;  %v1859_v16 = vmax.f32 %v1436_v49, 0.0  ;;  %v1830_v22 = vmax.f32 %v1481_v51, 0.0  ;;  %v1877_v27 = vmax.f32 %v1843_v40, %v1844_v12 }
 0x191   :  { %v1491_v62 = vadd.f32 %v3313_v34, %v3347_v36  ;;  %v1861_v3 = vmax.f32 %v1489_v14, 0.0 }
 0x192   :  { %v1860_v9 = vmax.f32 %v1438_v33, 0.0  ;;  %v1884_v4 = vmax.f32 %v1880_v61, %v1830_v22  ;;  %v1881_v1 = vmax.f32 %v1877_v27, %v1845_v31 }
 0x194   :  { %v1878_v17 = vmax.f32 %v1859_v16, %v1860_v9 }
 0x196   :  { %v1882_v45 = vmax.f32 %v1878_v17, %v1861_v3 }
 0x198   :  { %v1527_v55 = vpop.f32.mrf.mxu0 }
 0x199   :  { %v1528_v28 = vadd.f32 %v1527_v55, %v3329_v54 }
 0x19a   :  { %v1529_v48 = vpop.f32.mrf.mxu0 }
 0x19b   :  { %v1815_v58 = vmax.f32 %v1528_v28, 0.0  ;;  %v1530_v5 = vadd.f32 %v1529_v48, %v3329_v54  ;;  %v1487_v48 = vadd.f32 %v3311_v19, %v3344_v2  ;;  %v1862_v28 = vmax.f32 %v1491_v62, 0.0 }
 0x19c   :  { %v3315_v25 = vpop.f32.mrf.mxu1  ;;  %v1531_v6 = vpop.f32.mrf.mxu0 }
 0x19d   :  { %v1532_v8 = vadd.f32 %v1531_v6, %v3334_v37  ;;  %v1887_v0 = vmax.f32 %v1883_v13, %v1815_v58  ;;  %v1816_v26 = vmax.f32 %v1530_v5, 0.0  ;;  %v1886_v12 = vmax.f32 %v1882_v45, %v1862_v28 }
 0x19e   :  { %v3317_v38 = vpop.f32.mrf.mxu1  ;;  %v1533_v52 = vpop.f32.mrf.mxu0 }
 0x19f   :  { %v1831_v55 = vmax.f32 %v1532_v8, 0.0  ;;  %v1534_v6 = vadd.f32 %v1533_v52, %v3334_v37  ;;  %v1581_v52 = vadd.f32 %v3315_v25, %v3329_v54  ;;  %v1891_v33 = vmax.f32 %v1887_v0, %v1816_v26 }
 0x1a0   :  { %v3319_v41 = vpop.f32.mrf.mxu1  ;;  %v1583_v19 = vadd.f32 %v3317_v38, %v3329_v54 }
 0x1a1   :  { %v3321_v15 = vpop.f32.mrf.mxu0  ;;  %v1888_v24 = vmax.f32 %v1884_v4, %v1831_v55  ;;  %v1832_v57 = vmax.f32 %v1534_v6, 0.0  ;;  %v1585_v34 = vadd.f32 %v3319_v41, %v3334_v37 }
 0x1a2   :  { %v3323_v46 = vpop.f32.mrf.mxu1  ;;  %v1538_v11 = vadd.f32 %v3321_v15, %v3344_v2  ;;  %v1846_v15 = vmax.f32 %v1487_v48, 0.0  ;;  %v1818_v8 = vmax.f32 %v1583_v19, 0.0 }
 0x1a3   :  { %v3325_v32 = vpop.f32.mrf.mxu0  ;;  %v1892_v51 = vmax.f32 %v1888_v24, %v1832_v57  ;;  %v1833_v23 = vmax.f32 %v1585_v34, 0.0  ;;  %v1587_v9 = vadd.f32 %v3323_v46, %v3334_v37 }
 0x1a4   :  { %v3327_v60 = vpop.f32.mrf.mxu1  ;;  %v1847_v56 = vmax.f32 %v1538_v11, 0.0  ;;  %v1540_v25 = vadd.f32 %v3325_v32, %v3344_v2  ;;  %v1885_v20 = vmax.f32 %v1881_v1, %v1846_v15 }
 0x1a5   :  { %v1541_v18 = vpop.f32.mrf.mxu0  ;;  %v1896_v16 = vmax.f32 %v1892_v51, %v1833_v23  ;;  %v1591_v14 = vadd.f32 %v3327_v60, %v3344_v2  ;;  %v1834_v55 = vmax.f32 %v1587_v9, 0.0 }
 0x1a6   :  { %v3332_v39 = vpop.f32.mrf.mxu1  ;;  %v1542_v30 = vadd.f32 %v1541_v18, %v3347_v36  ;;  %v1817_v18 = vmax.f32 %v1581_v52, 0.0  ;;  %v1889_v58 = vmax.f32 %v1885_v20, %v1847_v56  ;;  %v1848_v32 = vmax.f32 %v1540_v25, 0.0 }
 0x1a7   :  { %v3338_v53 = vpop.f32.mrf.mxu0  ;;  %v1849_v48 = vmax.f32 %v1591_v14, 0.0  ;;  %v1593_v62 = vadd.f32 %v3332_v39, %v3344_v2 }
 0x1a8   :  { %v3341_v10 = vpop.f32.mrf.mxu1  ;;  %v1863_v7 = vmax.f32 %v1542_v30, 0.0  ;;  %v1544_v47 = vadd.f32 %v3338_v53, %v3347_v36  ;;  %v1895_v41 = vmax.f32 %v1891_v33, %v1817_v18  ;;  %v1893_v6 = vmax.f32 %v1889_v58, %v1848_v32 }
 0x1a9   :  { %v1595_v46 = vadd.f32 %v3341_v10, %v3347_v36  ;;  %v1850_v19 = vmax.f32 %v1593_v62, 0.0 }
 0x1aa   :  { %v3351_v50 = vpop.f32.mrf.mxu1  ;;  %v1890_v61 = vmax.f32 %v1886_v12, %v1863_v7  ;;  %v1864_v40 = vmax.f32 %v1544_v47, 0.0  ;;  %v1899_v27 = vmax.f32 %v1895_v41, %v1818_v8  ;;  %v1897_v30 = vmax.f32 %v1893_v6, %v1849_v48 }
 0x1ab   :  { %v1865_v3 = vmax.f32 %v1595_v46, 0.0  ;;  %v1597_v10 = vadd.f32 %v3351_v50, %v3347_v36 }
 0x1ac   :  { %v1894_v17 = vmax.f32 %v1890_v61, %v1864_v40  ;;  %v1901_v25 = vmax.f32 %v1897_v30, %v1850_v19 }
 0x1ad   :  { %v1866_v56 = vmax.f32 %v1597_v10, 0.0 }
 0x1ae   :  { %v1898_v57 = vmax.f32 %v1894_v17, %v1865_v3 }
 0x1bc   :  { %v1633_v63 = vpop.f32.mrf.mxu0 }
 0x1bd   :  { %v1634_v29 = vadd.f32 %v1633_v63, %v3329_v54 }
 0x1be   :  { %v3357_v21 = vpop.f32.mrf.mxu0 }
 0x1bf   :  { %v1819_v53 = vmax.f32 %v1634_v29, 0.0  ;;  %v1636_v63 = vadd.f32 %v3357_v21, %v3329_v54  ;;  %v1900_v21 = vmax.f32 %v1896_v16, %v1834_v55  ;;  %v1902_v29 = vmax.f32 %v1898_v57, %v1866_v56 }
 0x1c0   :  { %v3361_v43 = vpop.f32.mrf.mxu1  ;;  %v1637_v35 = vpop.f32.mrf.mxu0 }
 0x1c1   :  { %v1638_v5 = vadd.f32 %v1637_v35, %v3334_v37  ;;  %v1903_v0 = vmax.f32 %v1899_v27, %v1819_v53  ;;  %v1820_v26 = vmax.f32 %v1636_v63, 0.0  ;;  %v1687_v52 = vadd.f32 %v3361_v43, %v3329_v54 }
 0x1c2   :  { %v3367_v44 = vpop.f32.mrf.mxu1  ;;  %v1639_v59 = vpop.f32.mrf.mxu0 }
 0x1c3   :  { %v1835_v31 = vmax.f32 %v1638_v5, 0.0  ;;  %v1640_v35 = vadd.f32 %v1639_v59, %v3334_v37  ;;  %v1907_v45 = vmax.f32 %v1903_v0, %v1820_v26  ;;  %v1821_v50 = vmax.f32 %v1687_v52, 0.0 }
 0x1c4   :  { %v1690_v42 = vpop.f32.mrf.mxu1  ;;  %v1643_v49 = vpop.f32.mrf.mxu0  ;;  %v1689_v43 = vadd.f32 %v3367_v44, %v3329_v54 }
 0x1c5   :  { %v1644_v60 = vadd.f32 %v1643_v49, %v3344_v2  ;;  %v1904_v59 = vmax.f32 %v1900_v21, %v1835_v31  ;;  %v1836_v1 = vmax.f32 %v1640_v35, 0.0  ;;  %v1691_v39 = vadd.f32 %v1690_v42, %v3334_v37 }
 0x1c6   :  { %v1692_v38 = vpop.f32.mrf.mxu1  ;;  %v1645_v13 = vpop.f32.mrf.mxu0  ;;  %v1911_v49 = vmax.f32 %v1907_v45, %v1821_v50  ;;  %v1822_v23 = vmax.f32 %v1689_v43, 0.0 }
 0x1c7   :  { %v1851_v34 = vmax.f32 %v1644_v60, 0.0  ;;  %v1646_v15 = vadd.f32 %v1645_v13, %v3344_v2  ;;  %v1908_v18 = vmax.f32 %v1904_v59, %v1836_v1  ;;  %v1837_v20 = vmax.f32 %v1691_v39, 0.0 }
 0x1c8   :  { %v1696_v22 = vpop.f32.mrf.mxu1  ;;  %v1647_v4 = vpop.f32.mrf.mxu0  ;;  %v1693_v51 = vadd.f32 %v1692_v38, %v3334_v37  ;;  %v1915_v40 = vmax.f32 %v1911_v49, %v1822_v23 }
 0x1c9   :  { %v1648_v24 = vadd.f32 %v1647_v4, %v3347_v36  ;;  %v1905_v42 = vmax.f32 %v1901_v25, %v1851_v34  ;;  %v1852_v12 = vmax.f32 %v1646_v15, 0.0  ;;  %v1912_v58 = vmax.f32 %v1908_v18, %v1837_v20 }
 0x1ca   :  { %v1698_v11 = vpop.f32.mrf.mxu1  ;;  %v1649_v33 = vpop.f32.mrf.mxu0  ;;  %v1697_v44 = vadd.f32 %v1696_v22, %v3344_v2  ;;  %v1838_v13 = vmax.f32 %v1693_v51, 0.0 }
 0x1cb   :  { %v1867_v7 = vmax.f32 %v1648_v24, 0.0  ;;  %v1650_v47 = vadd.f32 %v1649_v33, %v3347_v36  ;;  %v1909_v16 = vmax.f32 %v1905_v42, %v1852_v12  ;;  %v1699_v17 = vadd.f32 %v1698_v11, %v3344_v2 }
 0x1cc   :  { %v1700_v28 = vpop.f32.mrf.mxu1  ;;  %v1916_v22 = vmax.f32 %v1912_v58, %v1838_v13  ;;  %v1853_v35 = vmax.f32 %v1697_v44, 0.0 }
 0x1cd   :  { %v1906_v32 = vmax.f32 %v1902_v29, %v1867_v7  ;;  %v1868_v5 = vmax.f32 %v1650_v47, 0.0  ;;  %v1701_v38 = vadd.f32 %v1700_v28, %v3347_v36  ;;  %v1854_v33 = vmax.f32 %v1699_v17, 0.0 }
 0x1ce   :  { %v1702_v8 = vpop.f32.mrf.mxu1  ;;  %v1913_v3 = vmax.f32 %v1909_v16, %v1853_v35 }
 0x1cf   :  { %v1910_v0 = vmax.f32 %v1906_v32, %v1868_v5  ;;  %v1869_v10 = vmax.f32 %v1701_v38, 0.0  ;;  %v1703_v52 = vadd.f32 %v1702_v8, %v3347_v36 }
 0x1d0   :  { %v1917_v43 = vmax.f32 %v1913_v3, %v1854_v33 }
 0x1d1   :  { %v1914_v15 = vmax.f32 %v1910_v0, %v1869_v10  ;;  %v1870_v49 = vmax.f32 %v1703_v52, 0.0 }
 0x1e6   :  { %v1739_v41 = vpop.f32.mrf.mxu0 }
 0x1e7   :  { %v1740_v9 = vadd.f32 %v1739_v41, %v3329_v54 }
 0x1e8   :  { %v1741_v61 = vpop.f32.mrf.mxu0 }
 0x1e9   :  { %v1823_v53 = vmax.f32 %v1740_v9, 0.0  ;;  %v1742_v63 = vadd.f32 %v1741_v61, %v3329_v54  ;;  %v1918_v9 = vmax.f32 %v1914_v15, %v1870_v49 }
 0x1ea   :  { %v1792_v14 = vpop.f32.mrf.mxu1  ;;  %v1743_v27 = vpop.f32.mrf.mxu0 }
 0x1eb   :  { %v1919_v46 = vmax.f32 %v1915_v40, %v1823_v53  ;;  %v1793_v55 = vadd.f32 %v1792_v14, %v3329_v54  ;;  %v1824_v6 = vmax.f32 %v1742_v63, 0.0  ;;  %v1744_v31 = vadd.f32 %v1743_v27, %v3334_v37 }
 0x1ec   :  { %v1794_v26 = vpop.f32.mrf.mxu1  ;;  %v1745_v4 = vpop.f32.mrf.mxu0 }
 0x1ed   :  { %v1825_v21 = vmax.f32 %v1793_v55, 0.0  ;;  %v1923_v48 = vmax.f32 %v1919_v46, %v1824_v6  ;;  %v1795_v62 = vadd.f32 %v1794_v26, %v3329_v54  ;;  %v1839_v60 = vmax.f32 %v1744_v31, 0.0 }
 0x1ee   :  { %v1796_v30 = vpop.f32.mrf.mxu1  ;;  %v1746_v59 = vadd.f32 %v1745_v4, %v3334_v37  ;;  %v1749_v1 = vpop.f32.mrf.mxu0 }
 0x1ef   :  { %v1826_v24 = vmax.f32 %v1795_v62, 0.0  ;;  %v1927_v57 = vmax.f32 %v1923_v48, %v1825_v21  ;;  %v1920_v45 = vmax.f32 %v1916_v22, %v1839_v60  ;;  %v1797_v11 = vadd.f32 %v1796_v30, %v3334_v37 }
 0x1f0   :  { %v1840_v19 = vmax.f32 %v1746_v59, 0.0  ;;  %v1798_v39 = vpop.f32.mrf.mxu1  ;;  %v1750_v34 = vadd.f32 %v1749_v1, %v3344_v2  ;;  %v1751_v54 = vpop.f32.mrf.mxu0 }
 0x1f1   :  { %v1931_v28 = vmax.f32 %v1927_v57, %v1826_v24  ;;  %v1799_v56 = vadd.f32 %v1798_v39, %v3334_v37  ;;  %v1752_v50 = vadd.f32 %v1751_v54, %v3344_v2  ;;  %v1841_v25 = vmax.f32 %v1797_v11, 0.0 }
 0x1f2   :  { %v1924_v18 = vmax.f32 %v1920_v45, %v1840_v19  ;;  %v1855_v7 = vmax.f32 %v1750_v34, 0.0  ;;  %v1802_v47 = vpop.f32.mrf.mxu1  ;;  %v1753_v29 = vpop.f32.mrf.mxu0 }
 0x1f3   :  { %1935 = vst [vmem:[#allocation2] sm:$0xff] %v1931_v28  ;;  %v1803_v20 = vadd.f32 %v1802_v47, %v3344_v2  ;;  %v1856_v51 = vmax.f32 %v1752_v50, 0.0  ;;  %v1754_v42 = vadd.f32 %v1753_v29, %v3347_v36  ;;  %v1842_v12 = vmax.f32 %v1799_v56, 0.0 }
 0x1f4   :  { %v1928_v8 = vmax.f32 %v1924_v18, %v1841_v25  ;;  %v1921_v41 = vmax.f32 %v1917_v43, %v1855_v7  ;;  %v1804_v23 = vpop.f32.mrf.mxu1  ;;  %v1755_v37 = vpop.f32.mrf.mxu0 }
 0x1f5   :  { %v1805_v58 = vadd.f32 %v1804_v23, %v3344_v2  ;;  %v1871_v44 = vmax.f32 %v1754_v42, 0.0  ;;  %v1756_v32 = vadd.f32 %v1755_v37, %v3347_v36  ;;  %v1857_v61 = vmax.f32 %v1803_v20, 0.0 }
 0x1f6   :  { %v1932_v5 = vmax.f32 %v1928_v8, %v1842_v12  ;;  %v1925_v40 = vmax.f32 %v1921_v41, %v1856_v51  ;;  %v1806_v53 = vpop.f32.mrf.mxu1 }
 0x1f7   :  { %v1922_v63 = vmax.f32 %v1918_v9, %v1871_v44  ;;  %v1807_v13 = vadd.f32 %v1806_v53, %v3347_v36  ;;  %v1872_v16 = vmax.f32 %v1756_v32, 0.0  ;;  %v1858_v38 = vmax.f32 %v1805_v58, 0.0 }
 0x1f8   :  { %1936 = vst [vmem:[#allocation2 + $0x8] sm:$0xff] %v1932_v5  ;;  %v1929_v14 = vmax.f32 %v1925_v40, %v1857_v61  ;;  %v1808_v27 = vpop.f32.mrf.mxu1 }
 0x1f9   :  { %v1873_v46 = vmax.f32 %v1807_v13, 0.0  ;;  %v1926_v55 = vmax.f32 %v1922_v63, %v1872_v16  ;;  %v1809_v6 = vadd.f32 %v1808_v27, %v3347_v36 }
 0x1fa   :  { %v1933_v2 = vmax.f32 %v1929_v14, %v1858_v38 }
 0x1fb   :  { %v1874_v31 = vmax.f32 %v1809_v6, 0.0  ;;  %v1930_v22 = vmax.f32 %v1926_v55, %v1873_v46 }
 0x1fc   :  { %1937 = vst [vmem:[#allocation2 + $0x10] sm:$0xff] %v1933_v2 }
 0x1fd   :  { %v1934_v35 = vmax.f32 %v1930_v22, %v1874_v31 }
 0x1ff   :  { %1938 = vst [vmem:[#allocation2 + $0x18] sm:$0xff] %v1934_v35 }
 0x200   :  { %2004 = shalt.err (!%p2001_p4)
}
 0x201   :  { %s2020_s9 = smov 128   ;;  %s2021_s10 = smov 8  }
 0x202   :  { %1950 = dma.vmem_to_hbm [thread:$0]  %s1945_s7, 512, %s3439_s5, [#allocation3], %s2020_s9, %s2020_s9, %s2021_s10  }
 0x203   :  { %2013 = dma.done.wait [#allocation3], 512  }
 0x204   :  { %2014 = vsyncadd [#allocation3], 4294966784 }
 0x205   :  { %1954 = vsyncpa [#allocation3], 1 }

</bundles_post_ra>
